<compile_context>
chip_gen: v5e
topology: v5e:2x2
jax: 0.10.0
libtpu: 0.0.40
codegen_flags: <defaults>
</compile_context>

<pallas_src>
import jax
import jax.numpy as jnp
from jax import lax
from jax.experimental import pallas as pl
from jax.experimental.pallas import tpu as pltpu

# ------------------------- model config (small, BART-like) -------------------------
B = 2      # batch
S = 8      # seq len
D = 32     # d_model / embed_dim
H = 4      # encoder_attention_heads
HC = 2     # context_num_heads
F = 64     # encoder_ffn_dim
BS = B * S
HD = D // H
HDC = D // HC
EPS = 1e-5
NEG = -1e9

# packed weight-slab column offsets (slab shape (D, 8*D + F))
_QKV_S = 0            # [0, 3D)    wq|wk|wv   (self-attn)
_WO_S = 3 * D         # [3D, 4D)   wo         (self-attn)
_QKV_C = 4 * D        # [4D, 7D)   wq|wk|wv   (context enforcer)
_WO_C = 7 * D         # [7D, 8D)   wo         (context enforcer)
_W1 = 8 * D           # [8D, 8D+F) fc1
_WD_COLS = 8 * D + F

# bias/LN slab rows (shape (12, 3D)); each row left-justified, zero padded
_B_QKV_S, _B_O_S, _B_QKV_C, _B_O_C, _B_F1, _B_F2 = 0, 1, 2, 3, 4, 5
_LN1G, _LN1B, _LN2G, _LN2B, _LN3G, _LN3B = 6, 7, 8, 9, 10, 11
_BROWS, _BCOLS = 12, 3 * D


# ------------------------------- in-kernel helpers ---------------------------------
def _layer_norm(x, g, b):
    mu = jnp.mean(x, axis=-1, keepdims=True)
    var = jnp.mean(jnp.square(x - mu), axis=-1, keepdims=True)
    return (x - mu) * lax.rsqrt(var + EPS) * g + b


def _gelu(x):
    # TODO(synk): HF ACT2FN["gelu"] is the exact erf-GELU; tanh approximation used
    # since erf lowering on Mosaic is not guaranteed (numerical diff < 1e-3).
    c = 0.7978845608028654  # sqrt(2/pi)
    return 0.5 * x * (1.0 + jnp.tanh(c * (x + 0.044715 * x * x * x)))


def _softmax(x):
    x = x - jnp.max(x, axis=-1, keepdims=True)
    e = jnp.exp(x)
    return e / jnp.sum(e, axis=-1, keepdims=True)


def _dot(a, b):
    return jnp.dot(a, b, preferred_element_type=jnp.float32)


# ----------------------------------- the kernel ------------------------------------
def encoder_layer_kernel(
    cb_ref,      # SMEM (2,) int32: context_boundary (start, end)
    hs_ref,      # VMEM (B, S, D)
    amask_ref,   # VMEM (B, 1, S, S) additive attention mask
    lhm_ref,     # VMEM (1, D) layer_head_mask expanded over each head's columns
    wd_ref,      # VMEM (D, 8D+F) packed weights: qkv_s | wo_s | qkv_c | wo_c | w1
    w2_ref,      # VMEM (F, D) fc2 weight
    bias_ref,    # VMEM (12, 3D) packed biases + LayerNorm params
    out_ref,     # VMEM (B, S, D)
):
    # SMEM scalar reads first (keeps the scalar path off the critical path).
    start = cb_ref[0]
    end = cb_ref[1]

    x = hs_ref[...].reshape(BS, D)       # (B*S, D)
    amask = amask_ref[...][:, 0]         # (B, S, S)

    # ----------------- BartAttention (self-attention) -----------------
    qkv = _dot(x, wd_ref[:, _QKV_S:_QKV_S + 3 * D]) + bias_ref[_B_QKV_S:_B_QKV_S + 1, :3 * D]
    q = (qkv[:, 0:D] * (HD ** -0.5)).reshape(B, S, D)
    k = qkv[:, D:2 * D].reshape(B, S, D)
    # layer_head_mask applied once: scaling head-h columns of V == scaling that
    # head's post-softmax probabilities.
    v = (qkv[:, 2 * D:3 * D] * lhm_ref[...]).reshape(B, S, D)

    attn = jnp.zeros((BS, D), jnp.float32)
    for h in range(H):
        sl = slice(h * HD, (h + 1) * HD)
        s = jnp.einsum('bqd,bkd->bqk', q[:, :, sl], k[:, :, sl],
                       preferred_element_type=jnp.float32) + amask
        p = _softmax(s)
        o = jnp.einsum('bqk,bkd->bqd', p, v[:, :, sl],
                       preferred_element_type=jnp.float32)
        # accumulate through the output projection: no concat needed.
        attn = attn + _dot(o.reshape(BS, HD), wd_ref[sl, _WO_S:_WO_S + D])
    attn = attn + bias_ref[_B_O_S:_B_O_S + 1, :D]
    x = _layer_norm(x + attn,
                    bias_ref[_LN1G:_LN1G + 1, :D], bias_ref[_LN1B:_LN1B + 1, :D])

    # ----------------- ContextEnforcement -----------------
    # TODO(synk): ContextEnforcement source not provided; implemented as multi-head
    # attention where keys/values are restricted to [context_boundary[0],
    # context_boundary[1]); its attended-states output (hidden_states[1] in torch)
    # is used.
    col = lax.broadcasted_iota(jnp.int32, (S, S), 1)
    ctx_bias = jnp.where((col >= start) & (col < end), 0.0, NEG).astype(jnp.float32)

    qkv_c = _dot(x, wd_ref[:, _QKV_C:_QKV_C + 3 * D]) + bias_ref[_B_QKV_C:_B_QKV_C + 1, :3 * D]
    qc = (qkv_c[:, 0:D] * (HDC ** -0.5)).reshape(B, S, D)
    kc = qkv_c[:, D:2 * D].reshape(B, S, D)
    vc = qkv_c[:, 2 * D:3 * D].reshape(B, S, D)

    ctx = jnp.zeros((BS, D), jnp.float32)
    for h in range(HC):
        sl = slice(h * HDC, (h + 1) * HDC)
        s = jnp.einsum('bqd,bkd->bqk', qc[:, :, sl], kc[:, :, sl],
                       preferred_element_type=jnp.float32) + ctx_bias
        p = _softmax(s)
        o = jnp.einsum('bqk,bkd->bqd', p, vc[:, :, sl],
                       preferred_element_type=jnp.float32)
        ctx = ctx + _dot(o.reshape(BS, HDC), wd_ref[sl, _WO_C:_WO_C + D])
    ctx = ctx + bias_ref[_B_O_C:_B_O_C + 1, :D]
    x = _layer_norm(x + ctx,
                    bias_ref[_LN2G:_LN2G + 1, :D], bias_ref[_LN2B:_LN2B + 1, :D])

    # ----------------- feed-forward -----------------
    h1 = _gelu(_dot(x, wd_ref[:, _W1:_W1 + F]) + bias_ref[_B_F1:_B_F1 + 1, :F])
    h2 = _dot(h1, w2_ref[...]) + bias_ref[_B_F2:_B_F2 + 1, :D]
    x = _layer_norm(x + h2,
                    bias_ref[_LN3G:_LN3G + 1, :D], bias_ref[_LN3B:_LN3B + 1, :D])

    out_ref[...] = x.reshape(B, S, D)
    # TODO(synk): lane-dense (B, S*D) output layout skipped at this toy size; at
    # real BART dims present a >=128-wide last dim to get unmasked stores.


# ----------------------------------- wrapper ----------------------------------------
def bart_encoder_layer_with_enforcer(hidden_states, attention_mask, context_boundary,
                                     layer_head_mask, packed_params):
    b, s, d = hidden_states.shape
    wd, w2, bias_slab = packed_params
    hd = d // layer_head_mask.shape[0]
    lhm_row = jnp.repeat(layer_head_mask.astype(jnp.float32), hd).reshape(1, d)

    def full_spec(a):
        return pl.BlockSpec(a.shape, lambda i, n=a.ndim: (0,) * n)

    in_specs = [
        pl.BlockSpec(memory_space=pltpu.MemorySpace.SMEM),   # context_boundary
        full_spec(hidden_states),
        full_spec(attention_mask),
        full_spec(lhm_row),
        full_spec(wd),
        full_spec(w2),
        full_spec(bias_slab),
    ]

    return pl.pallas_call(
        encoder_layer_kernel,
        out_shape=jax.ShapeDtypeStruct((b, s, d), jnp.float32),
        grid=(1,),                          # whole batch in a single kernel step
        in_specs=in_specs,
        out_specs=pl.BlockSpec((b, s, d), lambda i: (0, 0, 0)),
        compiler_params=pltpu.CompilerParams(dimension_semantics=("arbitrary",)),
    )(context_boundary, hidden_states, attention_mask, lhm_row, wd, w2, bias_slab)


# ------------------------------ parameter construction ------------------------------
def init_params(key):
    ks = list(jax.random.split(key, 16))

    def lin(k, din, dout):
        w = jax.random.normal(k, (din, dout), jnp.float32) * 0.02
        bb = jnp.zeros((1, dout), jnp.float32)
        return w, bb

    wq, bq = lin(ks[0], D, D)
    wk, bk = lin(ks[1], D, D)
    wv, bv = lin(ks[2], D, D)
    wo, bo = lin(ks[3], D, D)
    ln1g, ln1b = jnp.ones((1, D), jnp.float32), jnp.zeros((1, D), jnp.float32)

    wcq, bcq = lin(ks[4], D, D)
    wck, bck = lin(ks[5], D, D)
    wcv, bcv = lin(ks[6], D, D)
    wco, bco = lin(ks[7], D, D)
    ln2g, ln2b = jnp.ones((1, D), jnp.float32), jnp.zeros((1, D), jnp.float32)

    w1, bf1 = lin(ks[8], D, F)
    w2, bf2 = lin(ks[9], F, D)
    ln3g, ln3b = jnp.ones((1, D), jnp.float32), jnp.zeros((1, D), jnp.float32)

    return (wq, bq, wk, bk, wv, bv, wo, bo, ln1g, ln1b,
            wcq, bcq, wck, bck, wcv, bcv, wco, bco, ln2g, ln2b,
            w1, bf1, w2, bf2, ln3g, ln3b)


def pack_params(params):
    """Pack the 26 raw params into 3 slabs (done once, outside the kernel)."""
    (wq, bq, wk, bk, wv, bv, wo, bo, ln1g, ln1b,
     wcq, bcq, wck, bck, wcv, bcv, wco, bco, ln2g, ln2b,
     w1, bf1, w2, bf2, ln3g, ln3b) = params

    wd = jnp.concatenate([wq, wk, wv, wo, wcq, wck, wcv, wco, w1], axis=1)
    assert wd.shape == (D, _WD_COLS)

    def row(v):
        v = v.reshape(-1)
        return jnp.pad(v, (0, _BCOLS - v.shape[0]))

    bias_slab = jnp.stack([
        row(jnp.concatenate([bq, bk, bv], axis=1)),     # _B_QKV_S
        row(bo),                                        # _B_O_S
        row(jnp.concatenate([bcq, bck, bcv], axis=1)),  # _B_QKV_C
        row(bco),                                       # _B_O_C
        row(bf1),                                       # _B_F1
        row(bf2),                                       # _B_F2
        row(ln1g), row(ln1b),
        row(ln2g), row(ln2b),
        row(ln3g), row(ln3b),
    ], axis=0)
    assert bias_slab.shape == (_BROWS, _BCOLS)

    return wd, w2, bias_slab


# ------------------------------ pure-JAX reference -----------------------------------
def reference(hidden, amask, cb, lhm, params):
    (wq, bq, wk, bk, wv, bv, wo, bo, ln1g, ln1b,
     wcq, bcq, wck, bck, wcv, bcv, wco, bco, ln2g, ln2b,
     w1, bf1, w2, bf2, ln3g, ln3b) = params

    def one(x, am):
        am2 = am[0]
        hd = D // H
        q = (x @ wq + bq) * (hd ** -0.5)
        k = x @ wk + bk
        v = x @ wv + bv
        heads = []
        for h in range(H):
            sl = slice(h * hd, (h + 1) * hd)
            p = _softmax(q[:, sl] @ k[:, sl].T + am2) * lhm[h]
            heads.append(p @ v[:, sl])
        y = jnp.concatenate(heads, -1) @ wo + bo
        x = _layer_norm(x + y, ln1g, ln1b)

        col = jnp.arange(S)[None, :]
        bias = jnp.where((col >= cb[0]) & (col < cb[1]), 0.0, NEG)
        bias = jnp.broadcast_to(bias, (S, S)).astype(jnp.float32)
        hdc = D // HC
        qc = (x @ wcq + bcq) * (hdc ** -0.5)
        kc = x @ wck + bck
        vc = x @ wcv + bcv
        cheads = []
        for h in range(HC):
            sl = slice(h * hdc, (h + 1) * hdc)
            p = _softmax(qc[:, sl] @ kc[:, sl].T + bias)
            cheads.append(p @ vc[:, sl])
        y = jnp.concatenate(cheads, -1) @ wco + bco
        x = _layer_norm(x + y, ln2g, ln2b)

        y = _gelu(x @ w1 + bf1) @ w2 + bf2
        return _layer_norm(x + y, ln3g, ln3b)

    return jax.vmap(one)(hidden, amask)


# ----------------------------------------- main --------------------------------------
if __name__ == "__main__":
    key = jax.random.PRNGKey(0)
    k_hs, k_p = jax.random.split(key)

    hidden_states = jax.random.normal(k_hs, (B, S, D), jnp.float32)
    attention_mask = jnp.zeros((B, 1, S, S), jnp.float32)
    attention_mask = attention_mask.at[1, 0, :, -2:].set(NEG)   # pad last 2 keys of batch 1
    layer_head_mask = jnp.array([1.0, 1.0, 0.5, 1.0], jnp.float32)
    context_boundary = jnp.array([2, 6], jnp.int32)

    raw_params = init_params(k_p)
    packed_params = pack_params(raw_params)

    out = bart_encoder_layer_with_enforcer(
        hidden_states, attention_mask, context_boundary, layer_head_mask, packed_params)
    out = jax.block_until_ready(out)

    ref = reference(hidden_states, attention_mask, context_boundary, layer_head_mask,
                    raw_params)
    assert out.shape == (B, S, D) and out.dtype == jnp.float32
    assert bool(jnp.allclose(out, ref, atol=1e-4, rtol=1e-4)), "kernel/reference mismatch"

    print("KERNEL_OK")
</pallas_src>

<mosaic_0001>
module attributes {stable_mosaic.version = 11 : i64} {
  func.func @encoder_layer_kernel(%arg0: i32, %arg1: memref<2xi32, #tpu.memory_space<smem>>, %arg2: memref<2x8x32xf32, #tpu.memory_space<vmem>>, %arg3: memref<2x1x8x8xf32, #tpu.memory_space<vmem>>, %arg4: memref<1x32xf32, #tpu.memory_space<vmem>>, %arg5: memref<32x320xf32, #tpu.memory_space<vmem>>, %arg6: memref<64x32xf32, #tpu.memory_space<vmem>>, %arg7: memref<12x96xf32, #tpu.memory_space<vmem>>, %arg8: memref<2x8x32xf32, #tpu.memory_space<vmem>>) attributes {dimension_semantics = [#tpu.dimension_semantics<arbitrary>], iteration_bounds = array<i64: 1>, scalar_prefetch = 0 : i64, scratch_operands = 0 : i64, tpu.core_type = #tpu.core_type<tc>, window_params = [{transform_indices = @transform_0, window_bounds = array<i64: 2>}, {pipeline_mode = #tpu.pipeline_mode<synchronous>, transform_indices = @transform_1, window_bounds = array<i64: 2, 8, 32>}, {pipeline_mode = #tpu.pipeline_mode<synchronous>, transform_indices = @transform_2, window_bounds = array<i64: 2, 1, 8, 8>}, {pipeline_mode = #tpu.pipeline_mode<synchronous>, transform_indices = @transform_3, window_bounds = array<i64: 1, 32>}, {pipeline_mode = #tpu.pipeline_mode<synchronous>, transform_indices = @transform_4, window_bounds = array<i64: 32, 320>}, {pipeline_mode = #tpu.pipeline_mode<synchronous>, transform_indices = @transform_5, window_bounds = array<i64: 64, 32>}, {pipeline_mode = #tpu.pipeline_mode<synchronous>, transform_indices = @transform_6, window_bounds = array<i64: 12, 96>}, {pipeline_mode = #tpu.pipeline_mode<synchronous>, transform_indices = @transform_7, window_bounds = array<i64: 2, 8, 32>}]} {
    %c0 = arith.constant 0 : index
    %0 = memref.load %arg1[%c0] : memref<2xi32, #tpu.memory_space<smem>>
    %c1 = arith.constant 1 : index
    %1 = memref.load %arg1[%c1] : memref<2xi32, #tpu.memory_space<smem>>
    %c0_0 = arith.constant 0 : index
    %c0_1 = arith.constant 0 : index
    %c0_2 = arith.constant 0 : index
    %2 = vector.load %arg2[%c0_0, %c0_1, %c0_2] : memref<2x8x32xf32, #tpu.memory_space<vmem>>, vector<2x8x32xf32>
    %3 = vector.shape_cast %2 : vector<2x8x32xf32> to vector<16x32xf32>
    %c0_3 = arith.constant 0 : index
    %c0_4 = arith.constant 0 : index
    %c0_5 = arith.constant 0 : index
    %c0_6 = arith.constant 0 : index
    %4 = vector.load %arg3[%c0_3, %c0_4, %c0_5, %c0_6] : memref<2x1x8x8xf32, #tpu.memory_space<vmem>>, vector<2x1x8x8xf32>
    %5 = vector.shape_cast %4 : vector<2x1x8x8xf32> to vector<2x8x8xf32>
    %c0_7 = arith.constant 0 : index
    %c0_8 = arith.constant 0 : index
    %6 = vector.load %arg5[%c0_7, %c0_8] : memref<32x320xf32, #tpu.memory_space<vmem>>, vector<32x96xf32>
    %cst = arith.constant dense<0.000000e+00> : vector<16x96xf32>
    %7 = tpu.matmul %3, %6, %cst {dimension_numbers = #tpu.dot_dimension_numbers<[1], [0], [0], [1], [0, 0, 1, 1], [], []>} : vector<16x32xf32>, vector<32x96xf32>, vector<16x96xf32> -> vector<16x96xf32>
    %c0_9 = arith.constant 0 : index
    %c0_10 = arith.constant 0 : index
    %8 = vector.load %arg7[%c0_9, %c0_10] : memref<12x96xf32, #tpu.memory_space<vmem>>, vector<1x96xf32>
    %9 = vector.broadcast %8 : vector<1x96xf32> to vector<16x96xf32>
    %10 = arith.addf %7, %9 : vector<16x96xf32>
    %11 = vector.extract_strided_slice %10 {offsets = [0, 0], sizes = [16, 32], strides = [1, 1]} : vector<16x96xf32> to vector<16x32xf32>
    %cst_11 = arith.constant 0.353553385 : f32
    %12 = vector.broadcast %cst_11 : f32 to vector<16x32xf32>
    %13 = arith.mulf %11, %12 : vector<16x32xf32>
    %14 = vector.shape_cast %13 : vector<16x32xf32> to vector<2x8x32xf32>
    %15 = vector.extract_strided_slice %10 {offsets = [0, 32], sizes = [16, 32], strides = [1, 1]} : vector<16x96xf32> to vector<16x32xf32>
    %16 = vector.shape_cast %15 : vector<16x32xf32> to vector<2x8x32xf32>
    %17 = vector.extract_strided_slice %10 {offsets = [0, 64], sizes = [16, 32], strides = [1, 1]} : vector<16x96xf32> to vector<16x32xf32>
    %c0_12 = arith.constant 0 : index
    %c0_13 = arith.constant 0 : index
    %18 = vector.load %arg4[%c0_12, %c0_13] : memref<1x32xf32, #tpu.memory_space<vmem>>, vector<1x32xf32>
    %19 = vector.broadcast %18 : vector<1x32xf32> to vector<16x32xf32>
    %20 = arith.mulf %17, %19 : vector<16x32xf32>
    %21 = vector.shape_cast %20 : vector<16x32xf32> to vector<2x8x32xf32>
    %cst_14 = arith.constant 0.000000e+00 : f32
    %22 = vector.broadcast %cst_14 : f32 to vector<16x32xf32>
    %23 = vector.extract_strided_slice %14 {offsets = [0, 0, 0], sizes = [2, 8, 8], strides = [1, 1, 1]} : vector<2x8x32xf32> to vector<2x8x8xf32>
    %24 = vector.extract_strided_slice %16 {offsets = [0, 0, 0], sizes = [2, 8, 8], strides = [1, 1, 1]} : vector<2x8x32xf32> to vector<2x8x8xf32>
    "tpu.trace_start"() <{level = 10 : i32, message = "bqd,bkd->bqk"}> : () -> ()
    %cst_15 = arith.constant dense<0.000000e+00> : vector<2x8x8xf32>
    %25 = tpu.matmul %23, %24, %cst_15 {dimension_numbers = #tpu.dot_dimension_numbers<[2], [2], [1], [1], [0, 0, 0, 1, 1, 1], [0], [0]>} : vector<2x8x8xf32>, vector<2x8x8xf32>, vector<2x8x8xf32> -> vector<2x8x8xf32>
    "tpu.trace_stop"() : () -> ()
    %26 = arith.addf %25, %5 : vector<2x8x8xf32>
    %cst_16 = arith.constant dense<0xFF800000> : vector<2x8xf32>
    %27 = vector.multi_reduction <maximumf>, %26, %cst_16 [2] : vector<2x8x8xf32> to vector<2x8xf32>
    %28 = vector.shape_cast %27 : vector<2x8xf32> to vector<2x8x1xf32>
    %29 = vector.broadcast %28 : vector<2x8x1xf32> to vector<2x8x8xf32>
    %30 = arith.subf %26, %29 : vector<2x8x8xf32>
    %31 = math.exp %30 : vector<2x8x8xf32>
    %cst_17 = arith.constant dense<0.000000e+00> : vector<2x8xf32>
    %32 = vector.multi_reduction <add>, %31, %cst_17 [2] : vector<2x8x8xf32> to vector<2x8xf32>
    %33 = vector.shape_cast %32 : vector<2x8xf32> to vector<2x8x1xf32>
    %34 = vector.broadcast %33 : vector<2x8x1xf32> to vector<2x8x8xf32>
    %35 = arith.divf %31, %34 : vector<2x8x8xf32>
    %36 = vector.extract_strided_slice %21 {offsets = [0, 0, 0], sizes = [2, 8, 8], strides = [1, 1, 1]} : vector<2x8x32xf32> to vector<2x8x8xf32>
    "tpu.trace_start"() <{level = 10 : i32, message = "bqk,bkd->bqd"}> : () -> ()
    %cst_18 = arith.constant dense<0.000000e+00> : vector<2x8x8xf32>
    %37 = tpu.matmul %35, %36, %cst_18 {dimension_numbers = #tpu.dot_dimension_numbers<[2], [1], [1], [2], [0, 0, 0, 1, 1, 2], [0], [0]>} : vector<2x8x8xf32>, vector<2x8x8xf32>, vector<2x8x8xf32> -> vector<2x8x8xf32>
    "tpu.trace_stop"() : () -> ()
    %38 = vector.shape_cast %37 : vector<2x8x8xf32> to vector<16x8xf32>
    %c0_19 = arith.constant 0 : index
    %c96 = arith.constant 96 : index
    %39 = vector.load %arg5[%c0_19, %c96] : memref<32x320xf32, #tpu.memory_space<vmem>>, vector<8x32xf32>
    %cst_20 = arith.constant dense<0.000000e+00> : vector<16x32xf32>
    %40 = tpu.matmul %38, %39, %cst_20 {dimension_numbers = #tpu.dot_dimension_numbers<[1], [0], [0], [1], [0, 0, 1, 1], [], []>} : vector<16x8xf32>, vector<8x32xf32>, vector<16x32xf32> -> vector<16x32xf32>
    %41 = arith.addf %22, %40 : vector<16x32xf32>
    %42 = vector.extract_strided_slice %14 {offsets = [0, 0, 8], sizes = [2, 8, 8], strides = [1, 1, 1]} : vector<2x8x32xf32> to vector<2x8x8xf32>
    %43 = vector.extract_strided_slice %16 {offsets = [0, 0, 8], sizes = [2, 8, 8], strides = [1, 1, 1]} : vector<2x8x32xf32> to vector<2x8x8xf32>
    "tpu.trace_start"() <{level = 10 : i32, message = "bqd,bkd->bqk"}> : () -> ()
    %cst_21 = arith.constant dense<0.000000e+00> : vector<2x8x8xf32>
    %44 = tpu.matmul %42, %43, %cst_21 {dimension_numbers = #tpu.dot_dimension_numbers<[2], [2], [1], [1], [0, 0, 0, 1, 1, 1], [0], [0]>} : vector<2x8x8xf32>, vector<2x8x8xf32>, vector<2x8x8xf32> -> vector<2x8x8xf32>
    "tpu.trace_stop"() : () -> ()
    %45 = arith.addf %44, %5 : vector<2x8x8xf32>
    %cst_22 = arith.constant dense<0xFF800000> : vector<2x8xf32>
    %46 = vector.multi_reduction <maximumf>, %45, %cst_22 [2] : vector<2x8x8xf32> to vector<2x8xf32>
    %47 = vector.shape_cast %46 : vector<2x8xf32> to vector<2x8x1xf32>
    %48 = vector.broadcast %47 : vector<2x8x1xf32> to vector<2x8x8xf32>
    %49 = arith.subf %45, %48 : vector<2x8x8xf32>
    %50 = math.exp %49 : vector<2x8x8xf32>
    %cst_23 = arith.constant dense<0.000000e+00> : vector<2x8xf32>
    %51 = vector.multi_reduction <add>, %50, %cst_23 [2] : vector<2x8x8xf32> to vector<2x8xf32>
    %52 = vector.shape_cast %51 : vector<2x8xf32> to vector<2x8x1xf32>
    %53 = vector.broadcast %52 : vector<2x8x1xf32> to vector<2x8x8xf32>
    %54 = arith.divf %50, %53 : vector<2x8x8xf32>
    %55 = vector.extract_strided_slice %21 {offsets = [0, 0, 8], sizes = [2, 8, 8], strides = [1, 1, 1]} : vector<2x8x32xf32> to vector<2x8x8xf32>
    "tpu.trace_start"() <{level = 10 : i32, message = "bqk,bkd->bqd"}> : () -> ()
    %cst_24 = arith.constant dense<0.000000e+00> : vector<2x8x8xf32>
    %56 = tpu.matmul %54, %55, %cst_24 {dimension_numbers = #tpu.dot_dimension_numbers<[2], [1], [1], [2], [0, 0, 0, 1, 1, 2], [0], [0]>} : vector<2x8x8xf32>, vector<2x8x8xf32>, vector<2x8x8xf32> -> vector<2x8x8xf32>
    "tpu.trace_stop"() : () -> ()
    %57 = vector.shape_cast %56 : vector<2x8x8xf32> to vector<16x8xf32>
    %c8 = arith.constant 8 : index
    %c96_25 = arith.constant 96 : index
    %58 = vector.load %arg5[%c8, %c96_25] : memref<32x320xf32, #tpu.memory_space<vmem>>, vector<8x32xf32>
    %cst_26 = arith.constant dense<0.000000e+00> : vector<16x32xf32>
    %59 = tpu.matmul %57, %58, %cst_26 {dimension_numbers = #tpu.dot_dimension_numbers<[1], [0], [0], [1], [0, 0, 1, 1], [], []>} : vector<16x8xf32>, vector<8x32xf32>, vector<16x32xf32> -> vector<16x32xf32>
    %60 = arith.addf %41, %59 : vector<16x32xf32>
    %61 = vector.extract_strided_slice %14 {offsets = [0, 0, 16], sizes = [2, 8, 8], strides = [1, 1, 1]} : vector<2x8x32xf32> to vector<2x8x8xf32>
    %62 = vector.extract_strided_slice %16 {offsets = [0, 0, 16], sizes = [2, 8, 8], strides = [1, 1, 1]} : vector<2x8x32xf32> to vector<2x8x8xf32>
    "tpu.trace_start"() <{level = 10 : i32, message = "bqd,bkd->bqk"}> : () -> ()
    %cst_27 = arith.constant dense<0.000000e+00> : vector<2x8x8xf32>
    %63 = tpu.matmul %61, %62, %cst_27 {dimension_numbers = #tpu.dot_dimension_numbers<[2], [2], [1], [1], [0, 0, 0, 1, 1, 1], [0], [0]>} : vector<2x8x8xf32>, vector<2x8x8xf32>, vector<2x8x8xf32> -> vector<2x8x8xf32>
    "tpu.trace_stop"() : () -> ()
    %64 = arith.addf %63, %5 : vector<2x8x8xf32>
    %cst_28 = arith.constant dense<0xFF800000> : vector<2x8xf32>
    %65 = vector.multi_reduction <maximumf>, %64, %cst_28 [2] : vector<2x8x8xf32> to vector<2x8xf32>
    %66 = vector.shape_cast %65 : vector<2x8xf32> to vector<2x8x1xf32>
    %67 = vector.broadcast %66 : vector<2x8x1xf32> to vector<2x8x8xf32>
    %68 = arith.subf %64, %67 : vector<2x8x8xf32>
    %69 = math.exp %68 : vector<2x8x8xf32>
    %cst_29 = arith.constant dense<0.000000e+00> : vector<2x8xf32>
    %70 = vector.multi_reduction <add>, %69, %cst_29 [2] : vector<2x8x8xf32> to vector<2x8xf32>
    %71 = vector.shape_cast %70 : vector<2x8xf32> to vector<2x8x1xf32>
    %72 = vector.broadcast %71 : vector<2x8x1xf32> to vector<2x8x8xf32>
    %73 = arith.divf %69, %72 : vector<2x8x8xf32>
    %74 = vector.extract_strided_slice %21 {offsets = [0, 0, 16], sizes = [2, 8, 8], strides = [1, 1, 1]} : vector<2x8x32xf32> to vector<2x8x8xf32>
    "tpu.trace_start"() <{level = 10 : i32, message = "bqk,bkd->bqd"}> : () -> ()
    %cst_30 = arith.constant dense<0.000000e+00> : vector<2x8x8xf32>
    %75 = tpu.matmul %73, %74, %cst_30 {dimension_numbers = #tpu.dot_dimension_numbers<[2], [1], [1], [2], [0, 0, 0, 1, 1, 2], [0], [0]>} : vector<2x8x8xf32>, vector<2x8x8xf32>, vector<2x8x8xf32> -> vector<2x8x8xf32>
    "tpu.trace_stop"() : () -> ()
    %76 = vector.shape_cast %75 : vector<2x8x8xf32> to vector<16x8xf32>
    %c16 = arith.constant 16 : index
    %c96_31 = arith.constant 96 : index
    %77 = vector.load %arg5[%c16, %c96_31] : memref<32x320xf32, #tpu.memory_space<vmem>>, vector<8x32xf32>
    %cst_32 = arith.constant dense<0.000000e+00> : vector<16x32xf32>
    %78 = tpu.matmul %76, %77, %cst_32 {dimension_numbers = #tpu.dot_dimension_numbers<[1], [0], [0], [1], [0, 0, 1, 1], [], []>} : vector<16x8xf32>, vector<8x32xf32>, vector<16x32xf32> -> vector<16x32xf32>
    %79 = arith.addf %60, %78 : vector<16x32xf32>
    %80 = vector.extract_strided_slice %14 {offsets = [0, 0, 24], sizes = [2, 8, 8], strides = [1, 1, 1]} : vector<2x8x32xf32> to vector<2x8x8xf32>
    %81 = vector.extract_strided_slice %16 {offsets = [0, 0, 24], sizes = [2, 8, 8], strides = [1, 1, 1]} : vector<2x8x32xf32> to vector<2x8x8xf32>
    "tpu.trace_start"() <{level = 10 : i32, message = "bqd,bkd->bqk"}> : () -> ()
    %cst_33 = arith.constant dense<0.000000e+00> : vector<2x8x8xf32>
    %82 = tpu.matmul %80, %81, %cst_33 {dimension_numbers = #tpu.dot_dimension_numbers<[2], [2], [1], [1], [0, 0, 0, 1, 1, 1], [0], [0]>} : vector<2x8x8xf32>, vector<2x8x8xf32>, vector<2x8x8xf32> -> vector<2x8x8xf32>
    "tpu.trace_stop"() : () -> ()
    %83 = arith.addf %82, %5 : vector<2x8x8xf32>
    %cst_34 = arith.constant dense<0xFF800000> : vector<2x8xf32>
    %84 = vector.multi_reduction <maximumf>, %83, %cst_34 [2] : vector<2x8x8xf32> to vector<2x8xf32>
    %85 = vector.shape_cast %84 : vector<2x8xf32> to vector<2x8x1xf32>
    %86 = vector.broadcast %85 : vector<2x8x1xf32> to vector<2x8x8xf32>
    %87 = arith.subf %83, %86 : vector<2x8x8xf32>
    %88 = math.exp %87 : vector<2x8x8xf32>
    %cst_35 = arith.constant dense<0.000000e+00> : vector<2x8xf32>
    %89 = vector.multi_reduction <add>, %88, %cst_35 [2] : vector<2x8x8xf32> to vector<2x8xf32>
    %90 = vector.shape_cast %89 : vector<2x8xf32> to vector<2x8x1xf32>
    %91 = vector.broadcast %90 : vector<2x8x1xf32> to vector<2x8x8xf32>
    %92 = arith.divf %88, %91 : vector<2x8x8xf32>
    %93 = vector.extract_strided_slice %21 {offsets = [0, 0, 24], sizes = [2, 8, 8], strides = [1, 1, 1]} : vector<2x8x32xf32> to vector<2x8x8xf32>
    "tpu.trace_start"() <{level = 10 : i32, message = "bqk,bkd->bqd"}> : () -> ()
    %cst_36 = arith.constant dense<0.000000e+00> : vector<2x8x8xf32>
    %94 = tpu.matmul %92, %93, %cst_36 {dimension_numbers = #tpu.dot_dimension_numbers<[2], [1], [1], [2], [0, 0, 0, 1, 1, 2], [0], [0]>} : vector<2x8x8xf32>, vector<2x8x8xf32>, vector<2x8x8xf32> -> vector<2x8x8xf32>
    "tpu.trace_stop"() : () -> ()
    %95 = vector.shape_cast %94 : vector<2x8x8xf32> to vector<16x8xf32>
    %c24 = arith.constant 24 : index
    %c96_37 = arith.constant 96 : index
    %96 = vector.load %arg5[%c24, %c96_37] : memref<32x320xf32, #tpu.memory_space<vmem>>, vector<8x32xf32>
    %cst_38 = arith.constant dense<0.000000e+00> : vector<16x32xf32>
    %97 = tpu.matmul %95, %96, %cst_38 {dimension_numbers = #tpu.dot_dimension_numbers<[1], [0], [0], [1], [0, 0, 1, 1], [], []>} : vector<16x8xf32>, vector<8x32xf32>, vector<16x32xf32> -> vector<16x32xf32>
    %98 = arith.addf %79, %97 : vector<16x32xf32>
    %c1_39 = arith.constant 1 : index
    %c0_40 = arith.constant 0 : index
    %99 = vector.load %arg7[%c1_39, %c0_40] : memref<12x96xf32, #tpu.memory_space<vmem>>, vector<1x32xf32>
    %100 = vector.broadcast %99 : vector<1x32xf32> to vector<16x32xf32>
    %101 = arith.addf %98, %100 : vector<16x32xf32>
    %102 = arith.addf %3, %101 : vector<16x32xf32>
    %c6 = arith.constant 6 : index
    %c0_41 = arith.constant 0 : index
    %103 = vector.load %arg7[%c6, %c0_41] : memref<12x96xf32, #tpu.memory_space<vmem>>, vector<1x32xf32>
    %c7 = arith.constant 7 : index
    %c0_42 = arith.constant 0 : index
    %104 = vector.load %arg7[%c7, %c0_42] : memref<12x96xf32, #tpu.memory_space<vmem>>, vector<1x32xf32>
    %cst_43 = arith.constant dense<0.000000e+00> : vector<16xf32>
    %105 = vector.multi_reduction <add>, %102, %cst_43 [1] : vector<16x32xf32> to vector<16xf32>
    %106 = vector.shape_cast %105 : vector<16xf32> to vector<16x1xf32>
    %cst_44 = arith.constant 3.200000e+01 : f32
    %107 = vector.broadcast %cst_44 : f32 to vector<16x1xf32>
    %108 = arith.divf %106, %107 : vector<16x1xf32>
    %109 = vector.broadcast %108 : vector<16x1xf32> to vector<16x32xf32>
    %110 = arith.subf %102, %109 : vector<16x32xf32>
    %111 = arith.mulf %110, %110 : vector<16x32xf32>
    %cst_45 = arith.constant dense<0.000000e+00> : vector<16xf32>
    %112 = vector.multi_reduction <add>, %111, %cst_45 [1] : vector<16x32xf32> to vector<16xf32>
    %113 = vector.shape_cast %112 : vector<16xf32> to vector<16x1xf32>
    %cst_46 = arith.constant 3.200000e+01 : f32
    %114 = vector.broadcast %cst_46 : f32 to vector<16x1xf32>
    %115 = arith.divf %113, %114 : vector<16x1xf32>
    %116 = vector.broadcast %108 : vector<16x1xf32> to vector<16x32xf32>
    %117 = arith.subf %102, %116 : vector<16x32xf32>
    %cst_47 = arith.constant 9.99999974E-6 : f32
    %118 = vector.broadcast %cst_47 : f32 to vector<16x1xf32>
    %119 = arith.addf %115, %118 : vector<16x1xf32>
    %120 = math.rsqrt %119 : vector<16x1xf32>
    %121 = vector.broadcast %120 : vector<16x1xf32> to vector<16x32xf32>
    %122 = arith.mulf %117, %121 : vector<16x32xf32>
    %123 = vector.broadcast %103 : vector<1x32xf32> to vector<16x32xf32>
    %124 = arith.mulf %122, %123 : vector<16x32xf32>
    %125 = vector.broadcast %104 : vector<1x32xf32> to vector<16x32xf32>
    %126 = arith.addf %124, %125 : vector<16x32xf32>
    %127 = tpu.iota {dimensions = array<i32: 1>} : vector<8x8xi32>
    %128 = vector.broadcast %0 : i32 to vector<8x8xi32>
    %129 = arith.cmpi sge, %127, %128 : vector<8x8xi32>
    %130 = vector.broadcast %1 : i32 to vector<8x8xi32>
    %131 = arith.cmpi slt, %127, %130 : vector<8x8xi32>
    %132 = arith.andi %129, %131 : vector<8x8xi1>
    %cst_48 = arith.constant 0.000000e+00 : f32
    %cst_49 = arith.constant -1.000000e+09 : f32
    %133 = vector.broadcast %cst_48 : f32 to vector<8x8xf32>
    %134 = vector.broadcast %cst_49 : f32 to vector<8x8xf32>
    %135 = arith.select %132, %133, %134 : vector<8x8xi1>, vector<8x8xf32>
    %c0_50 = arith.constant 0 : index
    %c128 = arith.constant 128 : index
    %136 = vector.load %arg5[%c0_50, %c128] : memref<32x320xf32, #tpu.memory_space<vmem>>, vector<32x96xf32>
    %cst_51 = arith.constant dense<0.000000e+00> : vector<16x96xf32>
    %137 = tpu.matmul %126, %136, %cst_51 {dimension_numbers = #tpu.dot_dimension_numbers<[1], [0], [0], [1], [0, 0, 1, 1], [], []>} : vector<16x32xf32>, vector<32x96xf32>, vector<16x96xf32> -> vector<16x96xf32>
    %c2 = arith.constant 2 : index
    %c0_52 = arith.constant 0 : index
    %138 = vector.load %arg7[%c2, %c0_52] : memref<12x96xf32, #tpu.memory_space<vmem>>, vector<1x96xf32>
    %139 = vector.broadcast %138 : vector<1x96xf32> to vector<16x96xf32>
    %140 = arith.addf %137, %139 : vector<16x96xf32>
    %141 = vector.extract_strided_slice %140 {offsets = [0, 0], sizes = [16, 32], strides = [1, 1]} : vector<16x96xf32> to vector<16x32xf32>
    %cst_53 = arith.constant 2.500000e-01 : f32
    %142 = vector.broadcast %cst_53 : f32 to vector<16x32xf32>
    %143 = arith.mulf %141, %142 : vector<16x32xf32>
    %144 = vector.shape_cast %143 : vector<16x32xf32> to vector<2x8x32xf32>
    %145 = vector.extract_strided_slice %140 {offsets = [0, 32], sizes = [16, 32], strides = [1, 1]} : vector<16x96xf32> to vector<16x32xf32>
    %146 = vector.shape_cast %145 : vector<16x32xf32> to vector<2x8x32xf32>
    %147 = vector.extract_strided_slice %140 {offsets = [0, 64], sizes = [16, 32], strides = [1, 1]} : vector<16x96xf32> to vector<16x32xf32>
    %148 = vector.shape_cast %147 : vector<16x32xf32> to vector<2x8x32xf32>
    %cst_54 = arith.constant 0.000000e+00 : f32
    %149 = vector.broadcast %cst_54 : f32 to vector<16x32xf32>
    %150 = vector.extract_strided_slice %144 {offsets = [0, 0, 0], sizes = [2, 8, 16], strides = [1, 1, 1]} : vector<2x8x32xf32> to vector<2x8x16xf32>
    %151 = vector.extract_strided_slice %146 {offsets = [0, 0, 0], sizes = [2, 8, 16], strides = [1, 1, 1]} : vector<2x8x32xf32> to vector<2x8x16xf32>
    "tpu.trace_start"() <{level = 10 : i32, message = "bqd,bkd->bqk"}> : () -> ()
    %cst_55 = arith.constant dense<0.000000e+00> : vector<2x8x8xf32>
    %152 = tpu.matmul %150, %151, %cst_55 {dimension_numbers = #tpu.dot_dimension_numbers<[2], [2], [1], [1], [0, 0, 0, 1, 1, 1], [0], [0]>} : vector<2x8x16xf32>, vector<2x8x16xf32>, vector<2x8x8xf32> -> vector<2x8x8xf32>
    "tpu.trace_stop"() : () -> ()
    %153 = vector.shape_cast %135 : vector<8x8xf32> to vector<1x8x8xf32>
    %154 = vector.broadcast %153 : vector<1x8x8xf32> to vector<2x8x8xf32>
    %155 = arith.addf %152, %154 : vector<2x8x8xf32>
    %cst_56 = arith.constant dense<0xFF800000> : vector<2x8xf32>
    %156 = vector.multi_reduction <maximumf>, %155, %cst_56 [2] : vector<2x8x8xf32> to vector<2x8xf32>
    %157 = vector.shape_cast %156 : vector<2x8xf32> to vector<2x8x1xf32>
    %158 = vector.broadcast %157 : vector<2x8x1xf32> to vector<2x8x8xf32>
    %159 = arith.subf %155, %158 : vector<2x8x8xf32>
    %160 = math.exp %159 : vector<2x8x8xf32>
    %cst_57 = arith.constant dense<0.000000e+00> : vector<2x8xf32>
    %161 = vector.multi_reduction <add>, %160, %cst_57 [2] : vector<2x8x8xf32> to vector<2x8xf32>
    %162 = vector.shape_cast %161 : vector<2x8xf32> to vector<2x8x1xf32>
    %163 = vector.broadcast %162 : vector<2x8x1xf32> to vector<2x8x8xf32>
    %164 = arith.divf %160, %163 : vector<2x8x8xf32>
    %165 = vector.extract_strided_slice %148 {offsets = [0, 0, 0], sizes = [2, 8, 16], strides = [1, 1, 1]} : vector<2x8x32xf32> to vector<2x8x16xf32>
    "tpu.trace_start"() <{level = 10 : i32, message = "bqk,bkd->bqd"}> : () -> ()
    %cst_58 = arith.constant dense<0.000000e+00> : vector<2x8x16xf32>
    %166 = tpu.matmul %164, %165, %cst_58 {dimension_numbers = #tpu.dot_dimension_numbers<[2], [1], [1], [2], [0, 0, 0, 1, 1, 2], [0], [0]>} : vector<2x8x8xf32>, vector<2x8x16xf32>, vector<2x8x16xf32> -> vector<2x8x16xf32>
    "tpu.trace_stop"() : () -> ()
    %167 = vector.shape_cast %166 : vector<2x8x16xf32> to vector<16x16xf32>
    %c0_59 = arith.constant 0 : index
    %c224 = arith.constant 224 : index
    %168 = vector.load %arg5[%c0_59, %c224] : memref<32x320xf32, #tpu.memory_space<vmem>>, vector<16x32xf32>
    %cst_60 = arith.constant dense<0.000000e+00> : vector<16x32xf32>
    %169 = tpu.matmul %167, %168, %cst_60 {dimension_numbers = #tpu.dot_dimension_numbers<[1], [0], [0], [1], [0, 0, 1, 1], [], []>} : vector<16x16xf32>, vector<16x32xf32>, vector<16x32xf32> -> vector<16x32xf32>
    %170 = arith.addf %149, %169 : vector<16x32xf32>
    %171 = vector.extract_strided_slice %144 {offsets = [0, 0, 16], sizes = [2, 8, 16], strides = [1, 1, 1]} : vector<2x8x32xf32> to vector<2x8x16xf32>
    %172 = vector.extract_strided_slice %146 {offsets = [0, 0, 16], sizes = [2, 8, 16], strides = [1, 1, 1]} : vector<2x8x32xf32> to vector<2x8x16xf32>
    "tpu.trace_start"() <{level = 10 : i32, message = "bqd,bkd->bqk"}> : () -> ()
    %cst_61 = arith.constant dense<0.000000e+00> : vector<2x8x8xf32>
    %173 = tpu.matmul %171, %172, %cst_61 {dimension_numbers = #tpu.dot_dimension_numbers<[2], [2], [1], [1], [0, 0, 0, 1, 1, 1], [0], [0]>} : vector<2x8x16xf32>, vector<2x8x16xf32>, vector<2x8x8xf32> -> vector<2x8x8xf32>
    "tpu.trace_stop"() : () -> ()
    %174 = vector.shape_cast %135 : vector<8x8xf32> to vector<1x8x8xf32>
    %175 = vector.broadcast %174 : vector<1x8x8xf32> to vector<2x8x8xf32>
    %176 = arith.addf %173, %175 : vector<2x8x8xf32>
    %cst_62 = arith.constant dense<0xFF800000> : vector<2x8xf32>
    %177 = vector.multi_reduction <maximumf>, %176, %cst_62 [2] : vector<2x8x8xf32> to vector<2x8xf32>
    %178 = vector.shape_cast %177 : vector<2x8xf32> to vector<2x8x1xf32>
    %179 = vector.broadcast %178 : vector<2x8x1xf32> to vector<2x8x8xf32>
    %180 = arith.subf %176, %179 : vector<2x8x8xf32>
    %181 = math.exp %180 : vector<2x8x8xf32>
    %cst_63 = arith.constant dense<0.000000e+00> : vector<2x8xf32>
    %182 = vector.multi_reduction <add>, %181, %cst_63 [2] : vector<2x8x8xf32> to vector<2x8xf32>
    %183 = vector.shape_cast %182 : vector<2x8xf32> to vector<2x8x1xf32>
    %184 = vector.broadcast %183 : vector<2x8x1xf32> to vector<2x8x8xf32>
    %185 = arith.divf %181, %184 : vector<2x8x8xf32>
    %186 = vector.extract_strided_slice %148 {offsets = [0, 0, 16], sizes = [2, 8, 16], strides = [1, 1, 1]} : vector<2x8x32xf32> to vector<2x8x16xf32>
    "tpu.trace_start"() <{level = 10 : i32, message = "bqk,bkd->bqd"}> : () -> ()
    %cst_64 = arith.constant dense<0.000000e+00> : vector<2x8x16xf32>
    %187 = tpu.matmul %185, %186, %cst_64 {dimension_numbers = #tpu.dot_dimension_numbers<[2], [1], [1], [2], [0, 0, 0, 1, 1, 2], [0], [0]>} : vector<2x8x8xf32>, vector<2x8x16xf32>, vector<2x8x16xf32> -> vector<2x8x16xf32>
    "tpu.trace_stop"() : () -> ()
    %188 = vector.shape_cast %187 : vector<2x8x16xf32> to vector<16x16xf32>
    %c16_65 = arith.constant 16 : index
    %c224_66 = arith.constant 224 : index
    %189 = vector.load %arg5[%c16_65, %c224_66] : memref<32x320xf32, #tpu.memory_space<vmem>>, vector<16x32xf32>
    %cst_67 = arith.constant dense<0.000000e+00> : vector<16x32xf32>
    %190 = tpu.matmul %188, %189, %cst_67 {dimension_numbers = #tpu.dot_dimension_numbers<[1], [0], [0], [1], [0, 0, 1, 1], [], []>} : vector<16x16xf32>, vector<16x32xf32>, vector<16x32xf32> -> vector<16x32xf32>
    %191 = arith.addf %170, %190 : vector<16x32xf32>
    %c3 = arith.constant 3 : index
    %c0_68 = arith.constant 0 : index
    %192 = vector.load %arg7[%c3, %c0_68] : memref<12x96xf32, #tpu.memory_space<vmem>>, vector<1x32xf32>
    %193 = vector.broadcast %192 : vector<1x32xf32> to vector<16x32xf32>
    %194 = arith.addf %191, %193 : vector<16x32xf32>
    %195 = arith.addf %126, %194 : vector<16x32xf32>
    %c8_69 = arith.constant 8 : index
    %c0_70 = arith.constant 0 : index
    %196 = vector.load %arg7[%c8_69, %c0_70] : memref<12x96xf32, #tpu.memory_space<vmem>>, vector<1x32xf32>
    %c9 = arith.constant 9 : index
    %c0_71 = arith.constant 0 : index
    %197 = vector.load %arg7[%c9, %c0_71] : memref<12x96xf32, #tpu.memory_space<vmem>>, vector<1x32xf32>
    %cst_72 = arith.constant dense<0.000000e+00> : vector<16xf32>
    %198 = vector.multi_reduction <add>, %195, %cst_72 [1] : vector<16x32xf32> to vector<16xf32>
    %199 = vector.shape_cast %198 : vector<16xf32> to vector<16x1xf32>
    %cst_73 = arith.constant 3.200000e+01 : f32
    %200 = vector.broadcast %cst_73 : f32 to vector<16x1xf32>
    %201 = arith.divf %199, %200 : vector<16x1xf32>
    %202 = vector.broadcast %201 : vector<16x1xf32> to vector<16x32xf32>
    %203 = arith.subf %195, %202 : vector<16x32xf32>
    %204 = arith.mulf %203, %203 : vector<16x32xf32>
    %cst_74 = arith.constant dense<0.000000e+00> : vector<16xf32>
    %205 = vector.multi_reduction <add>, %204, %cst_74 [1] : vector<16x32xf32> to vector<16xf32>
    %206 = vector.shape_cast %205 : vector<16xf32> to vector<16x1xf32>
    %cst_75 = arith.constant 3.200000e+01 : f32
    %207 = vector.broadcast %cst_75 : f32 to vector<16x1xf32>
    %208 = arith.divf %206, %207 : vector<16x1xf32>
    %209 = vector.broadcast %201 : vector<16x1xf32> to vector<16x32xf32>
    %210 = arith.subf %195, %209 : vector<16x32xf32>
    %cst_76 = arith.constant 9.99999974E-6 : f32
    %211 = vector.broadcast %cst_76 : f32 to vector<16x1xf32>
    %212 = arith.addf %208, %211 : vector<16x1xf32>
    %213 = math.rsqrt %212 : vector<16x1xf32>
    %214 = vector.broadcast %213 : vector<16x1xf32> to vector<16x32xf32>
    %215 = arith.mulf %210, %214 : vector<16x32xf32>
    %216 = vector.broadcast %196 : vector<1x32xf32> to vector<16x32xf32>
    %217 = arith.mulf %215, %216 : vector<16x32xf32>
    %218 = vector.broadcast %197 : vector<1x32xf32> to vector<16x32xf32>
    %219 = arith.addf %217, %218 : vector<16x32xf32>
    %c0_77 = arith.constant 0 : index
    %c256 = arith.constant 256 : index
    %220 = vector.load %arg5[%c0_77, %c256] : memref<32x320xf32, #tpu.memory_space<vmem>>, vector<32x64xf32>
    %cst_78 = arith.constant dense<0.000000e+00> : vector<16x64xf32>
    %221 = tpu.matmul %219, %220, %cst_78 {dimension_numbers = #tpu.dot_dimension_numbers<[1], [0], [0], [1], [0, 0, 1, 1], [], []>} : vector<16x32xf32>, vector<32x64xf32>, vector<16x64xf32> -> vector<16x64xf32>
    %c4 = arith.constant 4 : index
    %c0_79 = arith.constant 0 : index
    %222 = vector.load %arg7[%c4, %c0_79] : memref<12x96xf32, #tpu.memory_space<vmem>>, vector<1x64xf32>
    %223 = vector.broadcast %222 : vector<1x64xf32> to vector<16x64xf32>
    %224 = arith.addf %221, %223 : vector<16x64xf32>
    %cst_80 = arith.constant 5.000000e-01 : f32
    %225 = vector.broadcast %cst_80 : f32 to vector<16x64xf32>
    %226 = arith.mulf %225, %224 : vector<16x64xf32>
    %cst_81 = arith.constant 4.471500e-02 : f32
    %227 = vector.broadcast %cst_81 : f32 to vector<16x64xf32>
    %228 = arith.mulf %227, %224 : vector<16x64xf32>
    %229 = arith.mulf %228, %224 : vector<16x64xf32>
    %230 = arith.mulf %229, %224 : vector<16x64xf32>
    %231 = arith.addf %224, %230 : vector<16x64xf32>
    %cst_82 = arith.constant 0.797884583 : f32
    %232 = vector.broadcast %cst_82 : f32 to vector<16x64xf32>
    %233 = arith.mulf %232, %231 : vector<16x64xf32>
    %234 = math.tanh %233 : vector<16x64xf32>
    %cst_83 = arith.constant 1.000000e+00 : f32
    %235 = vector.broadcast %cst_83 : f32 to vector<16x64xf32>
    %236 = arith.addf %235, %234 : vector<16x64xf32>
    %237 = arith.mulf %226, %236 : vector<16x64xf32>
    %c0_84 = arith.constant 0 : index
    %c0_85 = arith.constant 0 : index
    %238 = vector.load %arg6[%c0_84, %c0_85] : memref<64x32xf32, #tpu.memory_space<vmem>>, vector<64x32xf32>
    %cst_86 = arith.constant dense<0.000000e+00> : vector<16x32xf32>
    %239 = tpu.matmul %237, %238, %cst_86 {dimension_numbers = #tpu.dot_dimension_numbers<[1], [0], [0], [1], [0, 0, 1, 1], [], []>} : vector<16x64xf32>, vector<64x32xf32>, vector<16x32xf32> -> vector<16x32xf32>
    %c5 = arith.constant 5 : index
    %c0_87 = arith.constant 0 : index
    %240 = vector.load %arg7[%c5, %c0_87] : memref<12x96xf32, #tpu.memory_space<vmem>>, vector<1x32xf32>
    %241 = vector.broadcast %240 : vector<1x32xf32> to vector<16x32xf32>
    %242 = arith.addf %239, %241 : vector<16x32xf32>
    %243 = arith.addf %219, %242 : vector<16x32xf32>
    %c10 = arith.constant 10 : index
    %c0_88 = arith.constant 0 : index
    %244 = vector.load %arg7[%c10, %c0_88] : memref<12x96xf32, #tpu.memory_space<vmem>>, vector<1x32xf32>
    %c11 = arith.constant 11 : index
    %c0_89 = arith.constant 0 : index
    %245 = vector.load %arg7[%c11, %c0_89] : memref<12x96xf32, #tpu.memory_space<vmem>>, vector<1x32xf32>
    %cst_90 = arith.constant dense<0.000000e+00> : vector<16xf32>
    %246 = vector.multi_reduction <add>, %243, %cst_90 [1] : vector<16x32xf32> to vector<16xf32>
    %247 = vector.shape_cast %246 : vector<16xf32> to vector<16x1xf32>
    %cst_91 = arith.constant 3.200000e+01 : f32
    %248 = vector.broadcast %cst_91 : f32 to vector<16x1xf32>
    %249 = arith.divf %247, %248 : vector<16x1xf32>
    %250 = vector.broadcast %249 : vector<16x1xf32> to vector<16x32xf32>
    %251 = arith.subf %243, %250 : vector<16x32xf32>
    %252 = arith.mulf %251, %251 : vector<16x32xf32>
    %cst_92 = arith.constant dense<0.000000e+00> : vector<16xf32>
    %253 = vector.multi_reduction <add>, %252, %cst_92 [1] : vector<16x32xf32> to vector<16xf32>
    %254 = vector.shape_cast %253 : vector<16xf32> to vector<16x1xf32>
    %cst_93 = arith.constant 3.200000e+01 : f32
    %255 = vector.broadcast %cst_93 : f32 to vector<16x1xf32>
    %256 = arith.divf %254, %255 : vector<16x1xf32>
    %257 = vector.broadcast %249 : vector<16x1xf32> to vector<16x32xf32>
    %258 = arith.subf %243, %257 : vector<16x32xf32>
    %cst_94 = arith.constant 9.99999974E-6 : f32
    %259 = vector.broadcast %cst_94 : f32 to vector<16x1xf32>
    %260 = arith.addf %256, %259 : vector<16x1xf32>
    %261 = math.rsqrt %260 : vector<16x1xf32>
    %262 = vector.broadcast %261 : vector<16x1xf32> to vector<16x32xf32>
    %263 = arith.mulf %258, %262 : vector<16x32xf32>
    %264 = vector.broadcast %244 : vector<1x32xf32> to vector<16x32xf32>
    %265 = arith.mulf %263, %264 : vector<16x32xf32>
    %266 = vector.broadcast %245 : vector<1x32xf32> to vector<16x32xf32>
    %267 = arith.addf %265, %266 : vector<16x32xf32>
    %268 = vector.shape_cast %267 : vector<16x32xf32> to vector<2x8x32xf32>
    %c0_95 = arith.constant 0 : index
    %c0_96 = arith.constant 0 : index
    %c0_97 = arith.constant 0 : index
    %269 = vector.load %arg8[%c0_95, %c0_96, %c0_97] : memref<2x8x32xf32, #tpu.memory_space<vmem>>, vector<2x8x32xf32>
    tpu.vector_store %arg8[%c0_95, %c0_96, %c0_97], %268 {strides = array<i32>} : memref<2x8x32xf32, #tpu.memory_space<vmem>>, vector<2x8x32xf32>,
    return
  }
  func.func @transform_0(%arg0: i32) -> i32 {
    %c0_i32 = arith.constant 0 : i32
    %c0_i32_0 = arith.constant 0 : i32
    return %c0_i32 : i32
  }
  func.func @transform_1(%arg0: i32) -> (i32, i32, i32) {
    %c0_i32 = arith.constant 0 : i32
    %c0_i32_0 = arith.constant 0 : i32
    %c0_i32_1 = arith.constant 0 : i32
    %c0_i32_2 = arith.constant 0 : i32
    return %c0_i32, %c0_i32_0, %c0_i32_1 : i32, i32, i32
  }
  func.func @transform_2(%arg0: i32) -> (i32, i32, i32, i32) {
    %c0_i32 = arith.constant 0 : i32
    %c0_i32_0 = arith.constant 0 : i32
    %c0_i32_1 = arith.constant 0 : i32
    %c0_i32_2 = arith.constant 0 : i32
    %c0_i32_3 = arith.constant 0 : i32
    return %c0_i32, %c0_i32_0, %c0_i32_1, %c0_i32_2 : i32, i32, i32, i32
  }
  func.func @transform_3(%arg0: i32) -> (i32, i32) {
    %c0_i32 = arith.constant 0 : i32
    %c0_i32_0 = arith.constant 0 : i32
    %c0_i32_1 = arith.constant 0 : i32
    return %c0_i32, %c0_i32_0 : i32, i32
  }
  func.func @transform_4(%arg0: i32) -> (i32, i32) {
    %c0_i32 = arith.constant 0 : i32
    %c0_i32_0 = arith.constant 0 : i32
    %c0_i32_1 = arith.constant 0 : i32
    return %c0_i32, %c0_i32_0 : i32, i32
  }
  func.func @transform_5(%arg0: i32) -> (i32, i32) {
    %c0_i32 = arith.constant 0 : i32
    %c0_i32_0 = arith.constant 0 : i32
    %c0_i32_1 = arith.constant 0 : i32
    return %c0_i32, %c0_i32_0 : i32, i32
  }
  func.func @transform_6(%arg0: i32) -> (i32, i32) {
    %c0_i32 = arith.constant 0 : i32
    %c0_i32_0 = arith.constant 0 : i32
    %c0_i32_1 = arith.constant 0 : i32
    return %c0_i32, %c0_i32_0 : i32, i32
  }
  func.func @transform_7(%arg0: i32) -> (i32, i32, i32) {
    %c0_i32 = arith.constant 0 : i32
    %c0_i32_0 = arith.constant 0 : i32
    %c0_i32_1 = arith.constant 0 : i32
    %c0_i32_2 = arith.constant 0 : i32
    return %c0_i32, %c0_i32_0, %c0_i32_1 : i32, i32, i32
  }
}

</mosaic_0001>

<bundles_post_ra>
// kernel: tpu_custom_call.1
= control target key start
LH: loop header
LB: loop body
LE: loop exit
PB: predicated region body
PF: predicated region fallthrough
CT: control target
= control target key end

     0   :  { %12 = vsyncpa [#allocation5], 0  ;;  %s2366_s0 = inlined_call_operand.vmem [shape: s32[2], index: 0, kind: input, shape index: {}]   ;;  %s2367_s1 = inlined_call_operand.hbm [shape: f32[2,8,32], index: 1, kind: input, shape index: {}]   ;;  %s2368_s2 = inlined_call_operand.hbm [shape: f32[2,1,8,8], index: 2, kind: input, shape index: {}]   ;;  %s2369_s3 = inlined_call_operand.vmem [shape: f32[1,32], index: 3, kind: input, shape index: {}]   ;;  %s2370_s4 = inlined_call_operand.vmem [shape: f32[32,320], index: 4, kind: input, shape index: {}]   ;;  %s2371_s5 = inlined_call_operand.vmem [shape: f32[64,32], index: 5, kind: input, shape index: {}]   ;;  %s2372_s6 = inlined_call_operand.hbm [shape: f32[12,96], index: 6, kind: input, shape index: {}]   ;;  %s2373_s7 = inlined_call_operand.hbm [shape: f32[2,8,32], index: 7, kind: output, shape index: {}]  }
   0x1   :  { %13 = vsyncpa [#allocation3], 0 }
   0x2   :  { %14 = vsyncpa [#allocation8], 0 }
   0x3   :  { %15 = vsyncpa [#allocation4], 0  ;;  %s42_s26 = sshll.u32 %s2368_s2, 4  ;;  %s1924_s27 = smov [#allocation7]   ;;  %s43_s26 = int_to_ptr.hbm [resolvable:$true] %s42_s26 }
   0x4   :  { %s44_s28 = sshll.u32 %s1924_s27, 4  ;;  %s21_s8 = sshll.u32 %s2366_s0, 4  ;;  %s45_s28 = int_to_ptr.vmem [resolvable:$true] %s44_s28  ;;  %s22_s8 = int_to_ptr.vmem [resolvable:$true] %s21_s8 }
   0x5   :  { %s1925_s9 = smov 128   ;;  %s1926_s10 = smov 8  }
   0x6   :  { %50 = dma.hbm_to_vmem [thread:$0]  %s43_s26, 256, %s45_s28, [#allocation8], %s1925_s9, %s1925_s9, %s1926_s10  }
   0x7   :  { %s1927_s11 = smov [#allocation2]   ;;  %s29_s2 = sshll.u32 %s2367_s1, 4  ;;  %s30_s2 = int_to_ptr.hbm [resolvable:$true] %s29_s2 }
   0x8   :  { %24 = dma.vmem_to_smem %s22_s8, 16, %s1927_s11, [#allocation5]  }
   0x9   :  { %s1928_s14 = smov [#allocation6]   ;;  %s61_s0 = sshll.u32 %s2372_s6, 4  ;;  %s62_s0 = int_to_ptr.hbm [resolvable:$true] %s61_s0 }
   0xa   :  { %s31_s15 = sshll.u32 %s1928_s14, 4  ;;  %s1929_s18 = smov [#allocation9]   ;;  %s32_s15 = int_to_ptr.vmem [resolvable:$true] %s31_s15 }
   0xb   :  { %37 = dma.hbm_to_vmem [thread:$0]  %s30_s2, 256, %s32_s15, [#allocation3], %s1925_s9, %s1925_s9, %s1926_s10  }
   0xc   :  { %s63_s19 = sshll.u32 %s1929_s18, 4  ;;  %s64_s19 = int_to_ptr.vmem [resolvable:$true] %s63_s19 }
   0xd   :  { %69 = dma.hbm_to_vmem [thread:$0]  %s62_s0, 256, %s64_s19, [#allocation8], %s1925_s9, %s1925_s9, %s1926_s10  }
   0xe   :  { %1916 = dma.done.wait [#allocation5], 16  }
   0xf   :  { %1917 = vsyncadd [#allocation5], 4294967280 }
  0x10   :  { %1918 = dma.done.wait [#allocation3], 256  }
  0x11   :  { %1919 = vsyncadd [#allocation3], 4294967040 }
  0x12   :  { %1920 = dma.done.wait [#allocation8], 512  }
  0x13   :  { %1921 = vsyncadd [#allocation8], 4294966784 }
  0x14   :  { %86 = sfence }
  0x15   :  { %v2009_v0 = vld [vmem:[%s2370_s4 + $0x48] sm:$0xff]  ;;  %v2014_v1 = vld [vmem:[%s2370_s4 + $0x30] sm:$0xff]  ;;  %v2020_v2 = vld [vmem:[%s2370_s4 + $0x18] sm:$0xff]  ;;  %vm99_vm0 = vcmask 261120   ;;  %s1930_s26 = smov 88   ;;  %s1931_s27 = smov 96  }
  0x16   :  { %118 = vmatpush.msra.mxu0 %v2009_v0  ;;  %v2025_v3 = vld [vmem:[%s2370_s4] sm:$0xff]  ;;  %v2034_v5 = vld [vmem:[#allocation6 + $0x8] sm:$0xff]  ;;  %s1932_s28 = smov 120   ;;  %s1933_s8 = smov 64   ;;  %vm142_vm1 = vcmask 64512   ;;  %v2073_v20 = vld [vmem:[#allocation7] sm:$0xff] }
  0x17   :  { %v2028_v4 = vld [vmem:[#allocation6] sm:$0xff]  ;;  %v2079_v28 = vld [vmem:[#allocation7 + $0x8] sm:$0xff]  ;;  %s1935_s11 = smov 80   ;;  %s1936_s12 = smov 56  }
  0x18   :  { %119 = vmatpush.msra.mxu0 %v2014_v1  ;;  %v1729_v6 = vld [vmem:[#allocation9] ss:$0 sm:$0xff]  ;;  %s1937_s13 = smov 32   ;;  %s1938_s2 = smov 72  }
  0x19   :  { %v1730_v12 = vld [vmem:[%s2369_s3] ss:$0 sm:$0xff]  ;;  %s1934_s3 = smov 112   ;;  %s1939_s14 = smov 48  }
  0x1a   :  { %120 = vmatpush.msra.mxu0 %v2020_v2  ;;  %s1940_s15 = smov 104   ;;  %s1941_s16 = smov 40  }
  0x1b   :  { %s87_s22 = sld [smem:[#allocation2]]  ;;  %s1620_s24 = sshll.u32 %s2373_s7, 4  ;;  %s1621_s24 = int_to_ptr.hbm [resolvable:$true] %s1620_s24 }
  0x1c   :  { %121 = vmatpush.msra.mxu0 %v2025_v3  ;;  %s1635_s23 = sld [smem:[#allocation2 + $0x1]] }
  0x1d   :  { %1636 = vmatmul.msk.f32.vlgmr.msra.gmra.mxu0 %vm99_vm0, %v2028_v4 }
  0x25   :  { %1637 = vmatmul.msk.f32.gmra.mxu0 %vm99_vm0, %v2034_v5 }
  0x9a   :  { %v123_v7 = vpop.f32.mrf.mxu0 }
  0x9b   :  { %v2038_v8 = vadd.f32 %v1729_v6, %v123_v7 }
  0x9d   :  { %301 = vrot.lane.b32.xlu1 %v2038_v8, %s1930_s26  ;;  %140 = vrot.lane.b32.xlu0 %v2038_v8, %s1931_s27  ;;  %v2047_v11 = vmul.f32 0.35355338, %v2038_v8 }
  0xa2   :  { %v126_v9 = vpop.f32.mrf.mxu0 }
  0xa3   :  { %v2044_v10 = vadd.f32 %v1729_v6, %v126_v9 }
  0xa5   :  { %169 = vrot.lane.b32.xlu0 %v2044_v10, %s1931_s27  ;;  %299 = vrot.lane.b32.xlu1 %v2047_v11, %s1932_s28  ;;  %v2063_v16 = vmul.f32 0.35355338, %v2044_v10 }
  0xad   :  { %134 = vrot.lane.b32.xlu0 %v1730_v12, %s1933_s8 }
 0x10f   :  { %v302_v13 = vpop.permute.xlu1 %301  ;;  %v141_v14 = vpop.permute.xlu0 %140 }
 0x110   :  { %1638 = vmatpush.xpose.msk.msra.mxu1 %vm142_vm1, %v141_v14 }
 0x113   :  { %1639 = vmatmul.msk.f32.vlgmr.msra.gmra.mxu1 %vm142_vm1, %v2047_v11 }
 0x114   :  { %1644 = vmatpush.xpose.msk.msrb.mxu1 %vm142_vm1, %v302_v13 }
 0x117   :  { %v170_v15 = vpop.permute.xlu0 %169  ;;  %v300_v17 = vpop.permute.xlu1 %299 }
 0x118   :  { %1640 = vmatpush.xpose.msk.msra.mxu2 %vm142_vm1, %v170_v15 }
 0x11b   :  { %1641 = vmatmul.msk.f32.vlgmr.msra.gmra.mxu2 %vm142_vm1, %v2063_v16  ;;  %1645 = vmatmul.msk.f32.vlgmr.msrb.gmra.mxu1 %vm142_vm1, %v300_v17 }
 0x11f   :  { %v135_v18 = vpop.permute.xlu0 %134 }
 0x120   :  { %v2069_v19 = vmul.f32 %v135_v18, %v2038_v8  ;;  %v2096_v42 = vmul.f32 %v135_v18, %v2044_v10 }
 0x122   :  { %245 = vrot.lane.b32.xlu0 %v2069_v19, %s1933_s8 }
 0x190   :  { %v165_v21 = vpop.f32.mrf.mxu1 }
 0x191   :  { %v166_v22 = vadd.f32 %v165_v21, %v2073_v20 }
 0x193   :  { %v196_v23 = vsel %vm142_vm1, %v166_v22, -inf }
 0x194   :  { %v246_v24 = vpop.permute.xlu0 %245  ;;  %197 = vmax.xlane.f32.xlu2 %v196_v23 }
 0x195   :  { %266 = vmatpush.msra.mxu3 %v246_v24 }
 0x198   :  { %v324_v25 = vpop.f32.mrf.mxu1 }
 0x199   :  { %v325_v26 = vadd.f32 %v324_v25, %v2073_v20 }
 0x19b   :  { %v355_v27 = vsel %vm142_vm1, %v325_v26, -inf }
 0x19c   :  { %356 = vmax.xlane.f32.xlu0 %v355_v27 }
 0x19e   :  { %v193_v29 = vpop.f32.mrf.mxu2 }
 0x19f   :  { %v194_v30 = vadd.f32 %v193_v29, %v2079_v28 }
 0x1a1   :  { %v199_v31 = vsel %vm142_vm1, %v194_v30, -inf }
 0x1a2   :  { %200 = vmax.xlane.f32.xlu2 %v199_v31 }
 0x1b0   :  { %327 = vrot.lane.b32.xlu0 %v2063_v16, %s1932_s28 }
 0x1b8   :  { %522 = vrot.lane.b32.xlu0 %v2047_v11, %s1934_s3 }
 0x1c0   :  { %552 = vrot.lane.b32.xlu0 %v2044_v10, %s1935_s11 }
 0x207   :  { %v198_v32 = vpop.xlane.xlu2 %197 }
 0x208   :  { %v202_v33 = vsub.f32 %v166_v22, %v198_v32 }
 0x20a   :  { %v204_v34 = vmul.f32 1.442695, %v202_v33 }
 0x20c   :  { %1742 = vpow2.f32 %v204_v34 }
 0x20f   :  { %v357_v43 = vpop.xlane.xlu0 %356 }
 0x210   :  { %v361_v44 = vsub.f32 %v325_v26, %v357_v43 }
 0x212   :  { %v1743_v35 = vpop.eup %1742  ;;  %v363_v45 = vmul.f32 1.442695, %v361_v44 }
 0x213   :  { %v208_v36 = vsel %vm142_vm1, %v1743_v35, 0.0 }
 0x214   :  { %209 = vadd.xlane.f32.xlu1 %v208_v36 }
 0x215   :  { %v201_v37 = vpop.xlane.xlu2 %200 }
 0x216   :  { %v203_v38 = vsub.f32 %v194_v30, %v201_v37 }
 0x218   :  { %v206_v39 = vmul.f32 1.442695, %v203_v38 }
 0x21a   :  { %1744 = vpow2.f32 %v206_v39 }
 0x21b   :  { %1746 = vpow2.f32 %v363_v45 }
 0x220   :  { %v1745_v40 = vpop.eup %1744 }
 0x221   :  { %v211_v41 = vsel %vm142_vm1, %v1745_v40, 0.0  ;;  %v2102_v46 = vpop.eup %1746 }
 0x222   :  { %212 = vadd.xlane.f32.xlu2 %v211_v41  ;;  %v367_v47 = vsel %vm142_vm1, %v2102_v46, 0.0  ;;  %v328_v13 = vpop.permute.xlu0 %327 }
 0x22a   :  { %v523_v44 = vpop.permute.xlu0 %522 }
 0x22d   :  { %329 = vrot.lane.b32.xlu1 %v2044_v10, %s1930_s26 }
 0x235   :  { %403 = vrot.lane.b32.xlu1 %v2069_v19, %s1936_s12 }
 0x23a   :  { %272 = vrot.lane.b32.xlu2 %v2096_v42, %s1933_s8 }
 0x23d   :  { %524 = vrot.lane.b32.xlu1 %v2038_v8, %s1935_s11 }
 0x263   :  { %368 = vadd.xlane.f32.xlu2 %v367_v47 }
 0x27b   :  { %490 = vrot.lane.b32.xlu2 %v2025_v3, %s1937_s13 }
 0x287   :  { %v210_v48 = vpop.xlane.xlu1 %209 }
 0x288   :  { %1748 = vrcp.f32 %v210_v48  ;;  %v225_v52 = vand.u32 2147483648, %v210_v48  ;;  %v223_v54 = vand.u32 2147483647, %v210_v48  ;;  %vm219_vm3 = vweird.f32 %v210_v48 }
 0x28a   :  { %v226_v57 = vor.u32 1.1754944e-38, %v225_v52  ;;  %vm224_vm5 = vcmp.eq.f32.partialorder %v223_v54, 8.507059e+37 }
 0x28e   :  { %v1749_v49 = vpop.eup %1748 }
 0x28f   :  { %v215_v50 = vmul.f32 %v1749_v49, %v210_v48  ;;  %vm220_vm2 = vweird.f32 %v1749_v49 }
 0x290   :  { %vm221_vm4 = vmor %vm219_vm3, %vm220_vm2 }
 0x291   :  { %v216_v51 = vsub.f32 1.0, %v215_v50 }
 0x293   :  { %v217_v53 = vmul.f32 %v1749_v49, %v216_v51 }
 0x295   :  { %v213_v55 = vpop.xlane.xlu2 %212  ;;  %v218_v56 = vadd.f32 %v1749_v49, %v217_v53  ;;  %v553_v53 = vpop.permute.xlu0 %552 }
 0x296   :  { %1750 = vrcp.f32 %v213_v55  ;;  %v240_v7 = vand.u32 2147483648, %v213_v55  ;;  %v238_v12 = vand.u32 2147483647, %v213_v55  ;;  %vm234_vm7 = vweird.f32 %v213_v55 }
 0x297   :  { %v222_v58 = vsel %vm221_vm4, %v1749_v49, %v218_v56 }
 0x298   :  { %v227_v59 = vsel %vm224_vm5, %v226_v57, %v222_v58  ;;  %v241_v15 = vor.u32 1.1754944e-38, %v240_v7  ;;  %vm239_vm9 = vcmp.eq.f32.partialorder %v238_v12, 8.507059e+37 }
 0x299   :  { %v228_v60 = vmul.f32 %v1743_v35, %v227_v59 }
 0x29b   :  { %1642 = vmatmul.msk.f32.vlgmr.msra.gmra.mxu3 %vm142_vm1, %v228_v60 }
 0x29c   :  { %v1751_v61 = vpop.eup %1750 }
 0x29d   :  { %v230_v62 = vmul.f32 %v1751_v61, %v213_v55  ;;  %v273_v63 = vpop.permute.xlu2 %272  ;;  %vm235_vm6 = vweird.f32 %v1751_v61 }
 0x29e   :  { %293 = vmatpush.msrb.mxu3 %v273_v63  ;;  %vm236_vm8 = vmor %vm234_vm7, %vm235_vm6 }
 0x29f   :  { %v231_v3 = vsub.f32 1.0, %v230_v62  ;;  %v330_v6 = vpop.permute.xlu1 %329 }
 0x2a0   :  { %1646 = vmatpush.xpose.msk.msrb.mxu2 %vm142_vm1, %v330_v6 }
 0x2a1   :  { %v232_v9 = vmul.f32 %v1751_v61, %v231_v3 }
 0x2a3   :  { %v233_v14 = vadd.f32 %v1751_v61, %v232_v9  ;;  %1647 = vmatmul.msk.f32.vlgmr.msrb.gmra.mxu2 %vm142_vm1, %v328_v13 }
 0x2a5   :  { %v237_v17 = vsel %vm236_vm8, %v1751_v61, %v233_v14 }
 0x2a6   :  { %v242_v18 = vsel %vm239_vm9, %v241_v15, %v237_v17 }
 0x2a7   :  { %v404_v21 = vpop.permute.xlu1 %403  ;;  %v243_v22 = vmul.f32 %v1745_v40, %v242_v18 }
 0x2a8   :  { %424 = vmatpush.msra.mxu3 %v404_v21 }
 0x2a9   :  { %1643 = vmatmul.msk.f32.vlgmr.msrb.gmra.mxu3 %vm142_vm1, %v243_v22 }
 0x2af   :  { %v525_v37 = vpop.permute.xlu1 %524 }
 0x2d6   :  { %v369_v23 = vpop.xlane.xlu2 %368 }
 0x2d7   :  { %1752 = vrcp.f32 %v369_v23  ;;  %v384_v29 = vand.u32 2147483648, %v369_v23  ;;  %v382_v31 = vand.u32 2147483647, %v369_v23  ;;  %vm378_vm11 = vweird.f32 %v369_v23 }
 0x2d9   :  { %v385_v33 = vor.u32 1.1754944e-38, %v384_v29  ;;  %vm383_vm13 = vcmp.eq.f32.partialorder %v382_v31, 8.507059e+37 }
 0x2dd   :  { %v1753_v24 = vpop.eup %1752 }
 0x2de   :  { %v374_v25 = vmul.f32 %v1753_v24, %v369_v23  ;;  %v491_v26 = vpop.permute.xlu2 %490  ;;  %vm379_vm10 = vweird.f32 %v1753_v24 }
 0x2df   :  { %1692 = vmatpush.msrb.mxu3 %v491_v26  ;;  %514 = vmatpush.msrb.mxu0 %v491_v26  ;;  %vm380_vm12 = vmor %vm378_vm11, %vm379_vm10 }
 0x2e0   :  { %v375_v27 = vsub.f32 1.0, %v374_v25 }
 0x2e2   :  { %v376_v30 = vmul.f32 %v1753_v24, %v375_v27 }
 0x2e4   :  { %v377_v32 = vadd.f32 %v1753_v24, %v376_v30 }
 0x2e6   :  { %v381_v34 = vsel %vm380_vm12, %v1753_v24, %v377_v32 }
 0x2e7   :  { %v386_v35 = vsel %vm383_vm13, %v385_v33, %v381_v34 }
 0x2e8   :  { %v387_v36 = vmul.f32 %v2102_v46, %v386_v35 }
 0x2ea   :  { %1648 = vmatmul.msk.f32.vlgmr.msra.gmra.mxu3 %vm142_vm1, %v387_v36 }
 0x2eb   :  { %1654 = vmatpush.xpose.msk.msra.mxu3 %vm142_vm1, %v525_v37 }
 0x31e   :  { %v268_v38 = vpop.f32.mrf.mxu3 }
 0x31f   :  { %1652 = vmatmul.msk.f32.vlgmr.msrb.gmra.mxu0 %vm142_vm1, %v268_v38 }
 0x326   :  { %v352_v39 = vpop.f32.mrf.mxu2 }
 0x327   :  { %v353_v40 = vadd.f32 %v352_v39, %v2079_v28 }
 0x329   :  { %v358_v41 = vsel %vm142_vm1, %v353_v40, -inf }
 0x32a   :  { %359 = vmax.xlane.f32.xlu1 %v358_v41 }
 0x32c   :  { %v295_v43 = vpop.f32.mrf.mxu3 }
 0x32d   :  { %1653 = vmatmul.msk.f32.vlgmr.msrb.gmra.mxu3 %vm142_vm1, %v295_v43 }
 0x335   :  { %1655 = vmatmul.msk.f32.vlgmr.msra.gmra.mxu3 %vm142_vm1, %v523_v44 }
 0x343   :  { %429 = vrot.lane.b32.xlu1 %v2096_v42, %s1936_s12 }
 0x34b   :  { %716 = vrot.lane.b32.xlu1 %v2038_v8, %s1938_s2 }
 0x353   :  { %626 = vrot.lane.b32.xlu1 %v2069_v19, %s1939_s14 }
 0x36d   :  { %v2125_v49 = vpop.f32.mrf.mxu3 }
 0x39c   :  { %v2149_v30 = vpop.f32.mrf.mxu0 }
 0x39d   :  { %v360_v45 = vpop.xlane.xlu1 %359 }
 0x39e   :  { %v362_v46 = vsub.f32 %v353_v40, %v360_v45 }
 0x3a0   :  { %v365_v47 = vmul.f32 1.442695, %v362_v46 }
 0x3a2   :  { %1754 = vpow2.f32 %v365_v47 }
 0x3a8   :  { %v1755_v48 = vpop.eup %1754 }
 0x3a9   :  { %v370_v50 = vsel %vm142_vm1, %v1755_v48, 0.0 }
 0x3aa   :  { %371 = vadd.xlane.f32.xlu2 %v370_v50 }
 0x3b0   :  { %v2128_v51 = vpop.f32.mrf.mxu3 }
 0x3b5   :  { %v430_v52 = vpop.permute.xlu1 %429 }
 0x3b6   :  { %450 = vmatpush.msra.mxu1 %v430_v52 }
 0x3b8   :  { %1656 = vmatpush.xpose.msk.msrb.mxu1 %vm142_vm1, %v553_v53  ;;  %v547_v8 = vpop.f32.mrf.mxu3 }
 0x3b9   :  { %v548_v54 = vadd.f32 %v547_v8, %v2073_v20 }
 0x3bb   :  { %v578_v55 = vsel %vm142_vm1, %v548_v54, -inf }
 0x3bc   :  { %579 = vmax.xlane.f32.xlu0 %v578_v55 }
 0x3bd   :  { %v717_v56 = vpop.permute.xlu1 %716 }
 0x3be   :  { %1662 = vmatpush.xpose.msk.msra.mxu0 %vm142_vm1, %v717_v56 }
 0x3c2   :  { %550 = vrot.lane.b32.xlu2 %v2063_v16, %s1934_s3 }
 0x3c5   :  { %v627_v57 = vpop.permute.xlu1 %626 }
 0x3c6   :  { %647 = vmatpush.msrb.mxu3 %v627_v57 }
 0x3ca   :  { %744 = vrot.lane.b32.xlu2 %v2044_v10, %s1938_s2 }
 0x3d0   :  { %714 = vrot.lane.b32.xlu0 %v2047_v11, %s1940_s15 }
 0x41d   :  { %v372_v58 = vpop.xlane.xlu2 %371 }
 0x41e   :  { %1756 = vrcp.f32 %v372_v58  ;;  %v399_v63 = vand.u32 2147483648, %v372_v58  ;;  %v397_v6 = vand.u32 2147483647, %v372_v58  ;;  %vm393_vm15 = vweird.f32 %v372_v58 }
 0x420   :  { %v400_v9 = vor.u32 1.1754944e-38, %v399_v63  ;;  %vm398_vm3 = vcmp.eq.f32.partialorder %v397_v6, 8.507059e+37 }
 0x424   :  { %v1757_v59 = vpop.eup %1756 }
 0x425   :  { %v389_v60 = vmul.f32 %v1757_v59, %v372_v58  ;;  %v551_v61 = vpop.permute.xlu2 %550  ;;  %vm394_vm14 = vweird.f32 %v1757_v59 }
 0x426   :  { %vm395_vm2 = vmor %vm393_vm15, %vm394_vm14 }
 0x427   :  { %v390_v62 = vsub.f32 1.0, %v389_v60 }
 0x429   :  { %v391_v3 = vmul.f32 %v1757_v59, %v390_v62 }
 0x42b   :  { %v392_v7 = vadd.f32 %v1757_v59, %v391_v3 }
 0x42d   :  { %v396_v12 = vsel %vm395_vm2, %v1757_v59, %v392_v7  ;;  %v745_v10 = vpop.permute.xlu2 %744  ;;  %v1714_v59 = vpack.i.bf16 %v2009_v0, %v2014_v1 }
 0x42e   :  { %v401_v13 = vsel %vm398_vm3, %v400_v9, %v396_v12  ;;  %1664 = vmatpush.xpose.msk.msra.mxu3 %vm142_vm1, %v745_v10 }
 0x42f   :  { %v580_v11 = vpop.xlane.xlu0 %579  ;;  %v402_v14 = vmul.f32 %v1755_v48, %v401_v13 }
 0x430   :  { %v584_v15 = vsub.f32 %v548_v54, %v580_v11 }
 0x431   :  { %1649 = vmatmul.msk.f32.vlgmr.msra.gmra.mxu1 %vm142_vm1, %v402_v14 }
 0x432   :  { %v586_v17 = vmul.f32 1.442695, %v584_v15 }
 0x434   :  { %1758 = vpow2.f32 %v586_v17 }
 0x439   :  { %1657 = vmatmul.msk.f32.vlgmr.msrb.gmra.mxu1 %vm142_vm1, %v551_v61 }
 0x43a   :  { %v1759_v18 = vpop.eup %1758 }
 0x43b   :  { %v590_v21 = vsel %vm142_vm1, %v1759_v18, 0.0 }
 0x43c   :  { %591 = vadd.xlane.f32.xlu0 %v590_v21 }
 0x442   :  { %v715_v22 = vpop.permute.xlu0 %714 }
 0x443   :  { %1663 = vmatmul.msk.f32.vlgmr.msra.gmra.mxu0 %vm142_vm1, %v715_v22 }
 0x450   :  { %742 = vrot.lane.b32.xlu0 %v2063_v16, %s1940_s15 }
 0x4ae   :  { %v2146_v23 = vpop.f32.mrf.mxu1 }
 0x4af   :  { %v592_v24 = vpop.xlane.xlu0 %591 }
 0x4b0   :  { %1760 = vrcp.f32 %v592_v24  ;;  %v607_v33 = vand.u32 2147483648, %v592_v24  ;;  %v605_v35 = vand.u32 2147483647, %v592_v24  ;;  %vm601_vm5 = vweird.f32 %v592_v24 }
 0x4b2   :  { %v608_v36 = vor.u32 1.1754944e-38, %v607_v33  ;;  %vm606_vm7 = vcmp.eq.f32.partialorder %v605_v35, 8.507059e+37 }
 0x4b6   :  { %v1761_v25 = vpop.eup %1760  ;;  %v575_v26 = vpop.f32.mrf.mxu1 }
 0x4b7   :  { %v597_v27 = vmul.f32 %v1761_v25, %v592_v24  ;;  %v576_v29 = vadd.f32 %v575_v26, %v2079_v28  ;;  %vm602_vm4 = vweird.f32 %v1761_v25 }
 0x4b8   :  { %vm603_vm6 = vmor %vm601_vm5, %vm602_vm4 }
 0x4b9   :  { %v598_v31 = vsub.f32 1.0, %v597_v27  ;;  %v581_v32 = vsel %vm142_vm1, %v576_v29, -inf }
 0x4ba   :  { %582 = vmax.xlane.f32.xlu1 %v581_v32 }
 0x4bb   :  { %v599_v34 = vmul.f32 %v1761_v25, %v598_v31 }
 0x4bd   :  { %v600_v16 = vadd.f32 %v1761_v25, %v599_v34 }
 0x4bf   :  { %v604_v37 = vsel %vm603_vm6, %v1761_v25, %v600_v16 }
 0x4c0   :  { %v609_v38 = vsel %vm606_vm7, %v608_v36, %v604_v37  ;;  %v739_v39 = vpop.f32.mrf.mxu0 }
 0x4c1   :  { %v740_v40 = vadd.f32 %v739_v39, %v2073_v20  ;;  %v610_v41 = vmul.f32 %v1759_v18, %v609_v38 }
 0x4c2   :  { %v743_v44 = vpop.permute.xlu0 %742 }
 0x4c3   :  { %1658 = vmatmul.msk.f32.vlgmr.msrb.gmra.mxu3 %vm142_vm1, %v610_v41  ;;  %v770_v43 = vsel %vm142_vm1, %v740_v40, -inf }
 0x4c4   :  { %771 = vmax.xlane.f32.xlu2 %v770_v43 }
 0x4cb   :  { %1665 = vmatmul.msk.f32.vlgmr.msra.gmra.mxu3 %vm142_vm1, %v743_v44 }
 0x52d   :  { %v583_v45 = vpop.xlane.xlu1 %582 }
 0x52e   :  { %v585_v46 = vsub.f32 %v576_v29, %v583_v45 }
 0x530   :  { %v588_v47 = vmul.f32 1.442695, %v585_v46 }
 0x532   :  { %1762 = vpow2.f32 %v588_v47 }
 0x537   :  { %v772_v48 = vpop.xlane.xlu2 %771 }
 0x538   :  { %v1763_v50 = vpop.eup %1762  ;;  %v776_v52 = vsub.f32 %v740_v40, %v772_v48 }
 0x539   :  { %v593_v53 = vsel %vm142_vm1, %v1763_v50, 0.0 }
 0x53a   :  { %v778_v8 = vmul.f32 1.442695, %v776_v52  ;;  %594 = vadd.xlane.f32.xlu1 %v593_v53 }
 0x53c   :  { %1764 = vpow2.f32 %v778_v8 }
 0x542   :  { %v2157_v20 = vpop.eup %1764 }
 0x543   :  { %v782_v54 = vsel %vm142_vm1, %v2157_v20, 0.0 }
 0x544   :  { %783 = vadd.xlane.f32.xlu2 %v782_v54 }
 0x546   :  { %v2161_v55 = vpop.f32.mrf.mxu3 }
 0x54e   :  { %v767_v56 = vpop.f32.mrf.mxu3 }
 0x54f   :  { %v768_v57 = vadd.f32 %v767_v56, %v2079_v28  ;;  %v1731_v56 = vld [vmem:[#allocation9 + $0x1] ss:$0 sm:$0xff] }
 0x551   :  { %v773_v58 = vsel %vm142_vm1, %v768_v57, -inf }
 0x552   :  { %774 = vmax.xlane.f32.xlu0 %v773_v58 }
 0x553   :  { %818 = vrot.lane.b32.xlu1 %v2069_v19, %s1941_s16 }
 0x55b   :  { %1715 = vrot.lane.b32.xlu1 %v1714_v59, %s1937_s13 }
 0x566   :  { %652 = vrot.lane.b32.xlu0 %v2096_v42, %s1939_s14 }
 0x56e   :  { %457 = vrot.lane.b32.xlu0 %v2020_v2, %s1937_s13 }
 0x5ad   :  { %v595_v60 = vpop.xlane.xlu1 %594 }
 0x5ae   :  { %1766 = vrcp.f32 %v595_v60  ;;  %v622_v11 = vand.u32 2147483648, %v595_v60  ;;  %vm616_vm9 = vweird.f32 %v595_v60  ;;  %v620_v15 = vand.u32 2147483647, %v595_v60 }
 0x5b0   :  { %v623_v22 = vor.u32 1.1754944e-38, %v622_v11  ;;  %vm621_vm11 = vcmp.eq.f32.partialorder %v620_v15, 8.507059e+37 }
 0x5b4   :  { %v1767_v61 = vpop.eup %1766 }
 0x5b5   :  { %v612_v62 = vmul.f32 %v1767_v61, %v595_v60  ;;  %vm617_vm8 = vweird.f32 %v1767_v61 }
 0x5b6   :  { %vm618_vm10 = vmor %vm616_vm9, %vm617_vm8 }
 0x5b7   :  { %v784_v28 = vpop.xlane.xlu2 %783  ;;  %v613_v19 = vsub.f32 1.0, %v612_v62 }
 0x5b8   :  { %1768 = vrcp.f32 %v784_v28  ;;  %v799_v26 = vand.u32 2147483648, %v784_v28  ;;  %vm793_vm13 = vweird.f32 %v784_v28  ;;  %v797_v27 = vand.u32 2147483647, %v784_v28 }
 0x5b9   :  { %v614_v1 = vmul.f32 %v1767_v61, %v613_v19 }
 0x5ba   :  { %v800_v33 = vor.u32 1.1754944e-38, %v799_v26  ;;  %vm798_vm15 = vcmp.eq.f32.partialorder %v797_v27, 8.507059e+37 }
 0x5bb   :  { %v615_v10 = vadd.f32 %v1767_v61, %v614_v1 }
 0x5bd   :  { %v619_v18 = vsel %vm618_vm10, %v1767_v61, %v615_v10  ;;  %v1942_v61 = vmov 32.0  }
 0x5be   :  { %v1769_v7 = vpop.eup %1768  ;;  %v624_v24 = vsel %vm621_vm11, %v623_v22, %v619_v18  ;;  %v2209_v18 = vld [vmem:[%s2370_s4 + $0x38] sm:$0xff] }
 0x5bf   :  { %v789_v9 = vmul.f32 %v1769_v7, %v784_v28  ;;  %vm794_vm12 = vweird.f32 %v1769_v7  ;;  %v625_v31 = vmul.f32 %v1763_v50, %v624_v24 }
 0x5c0   :  { %vm795_vm14 = vmor %vm793_vm13, %vm794_vm12  ;;  %vm1019_vm13 = vcmask 130048  }
 0x5c1   :  { %v790_v13 = vsub.f32 1.0, %v789_v9 }
 0x5c3   :  { %v791_v21 = vmul.f32 %v1769_v7, %v790_v13 }
 0x5c5   :  { %v819_v63 = vpop.permute.xlu1 %818  ;;  %v775_v3 = vpop.xlane.xlu0 %774  ;;  %v792_v25 = vadd.f32 %v1769_v7, %v791_v21  ;;  %v2220_v21 = vld [vmem:[%s2370_s4 + $0x8] sm:$0xff] }
 0x5c6   :  { %v777_v6 = vsub.f32 %v768_v57, %v775_v3 }
 0x5c7   :  { %v796_v32 = vsel %vm795_vm14, %v1769_v7, %v792_v25 }
 0x5c8   :  { %v780_v0 = vmul.f32 1.442695, %v777_v6  ;;  %v801_v34 = vsel %vm798_vm15, %v800_v33, %v796_v32 }
 0x5c9   :  { %v802_v36 = vmul.f32 %v2157_v20, %v801_v34 }
 0x5ca   :  { %1770 = vpow2.f32 %v780_v0 }
 0x5cd   :  { %v1716_v12 = vpop.permute.xlu1 %1715 }
 0x5ce   :  { %v1718_v2 = vunpack.i.h.bf16 %v1716_v12  ;;  %v1717_v35 = vunpack.i.l.bf16 %v1716_v12 }
 0x5d0   :  { %v1771_v14 = vpop.eup %1770  ;;  %896 = vmatpush.msrb.mxu3 %v1718_v2 }
 0x5d1   :  { %v785_v17 = vsel %vm142_vm1, %v1771_v14, 0.0 }
 0x5d2   :  { %786 = vadd.xlane.f32.xlu2 %v785_v17  ;;  %v2203_v17 = vld [vmem:[%s2370_s4 + $0x50] sm:$0xff] }
 0x5d8   :  { %v653_v29 = vpop.permute.xlu0 %652 }
 0x5d9   :  { %673 = vmatpush.msra.mxu1 %v653_v29 }
 0x5da   :  { %1659 = vmatmul.msk.f32.vlgmr.msra.gmra.mxu1 %vm142_vm1, %v625_v31 }
 0x5db   :  { %839 = vmatpush.msrb.mxu1 %v819_v63 }
 0x5dd   :  { %1003 = vmatpush.msra.mxu1 %v2203_v17 }
 0x5df   :  { %1004 = vmatpush.msra.mxu1 %v2209_v18 }
 0x5e0   :  { %v458_v16 = vpop.permute.xlu0 %457 }
 0x5e1   :  { %481 = vmatpush.msra.mxu2 %v458_v16 }
 0x5e2   :  { %1650 = vmatmul.msk.f32.vlgmr.msra.gmra.mxu2 %vm142_vm1, %v2125_v49  ;;  %1666 = vmatmul.msk.f32.vlgmr.msrb.gmra.mxu1 %vm142_vm1, %v802_v36 }
 0x5e3   :  { %704 = vmatpush.msrb.mxu2 %v1717_v35 }
 0x5ea   :  { %1651 = vmatmul.msk.f32.gmra.mxu2 %vm142_vm1, %v2146_v23  ;;  %844 = vrot.lane.b32.xlu2 %v2096_v42, %s1941_s16 }
 0x5f2   :  { %1660 = vmatmul.msk.f32.vlgmr.msrb.gmra.mxu2 %vm142_vm1, %v2161_v55 }
 0x645   :  { %v787_v37 = vpop.xlane.xlu2 %786 }
 0x646   :  { %1772 = vrcp.f32 %v787_v37  ;;  %v814_v49 = vand.u32 2147483648, %v787_v37  ;;  %v812_v44 = vand.u32 2147483647, %v787_v37  ;;  %vm808_vm3 = vweird.f32 %v787_v37 }
 0x647   :  { %1774 = vrcp.f32 %v1942_v61 }
 0x648   :  { %v815_v23 = vor.u32 1.1754944e-38, %v814_v49  ;;  %vm813_vm5 = vcmp.eq.f32.partialorder %v812_v44, 8.507059e+37 }
 0x64c   :  { %v1773_v38 = vpop.eup %1772 }
 0x64d   :  { %v804_v39 = vmul.f32 %v1773_v38, %v787_v37  ;;  %v845_v40 = vpop.permute.xlu2 %844  ;;  %vm809_vm2 = vweird.f32 %v1773_v38  ;;  %v1775_v62 = vpop.eup %1774 }
 0x64e   :  { %865 = vmatpush.msrb.mxu0 %v845_v40  ;;  %vm810_vm4 = vmor %vm808_vm3, %vm809_vm2  ;;  %v921_v63 = vmul.f32 32.0, %v1775_v62  ;;  %vm925_vm6 = vweird.f32 %v1775_v62 }
 0x64f   :  { %v805_v41 = vsub.f32 1.0, %v804_v39 }
 0x650   :  { %v922_v3 = vsub.f32 1.0, %v921_v63 }
 0x651   :  { %v806_v43 = vmul.f32 %v1773_v38, %v805_v41  ;;  %v1733_v41 = vld [vmem:[#allocation9 + $0x7] ss:$0 sm:$0xff] }
 0x652   :  { %v923_v19 = vmul.f32 %v1775_v62, %v922_v3 }
 0x653   :  { %v807_v45 = vadd.f32 %v1773_v38, %v806_v43 }
 0x655   :  { %v811_v46 = vsel %vm810_vm4, %v1773_v38, %v807_v45  ;;  %v1732_v38 = vld [vmem:[#allocation9 + $0x6] ss:$0 sm:$0xff] }
 0x656   :  { %v816_v42 = vsel %vm813_vm5, %v815_v23, %v811_v46 }
 0x657   :  { %v675_v47 = vpop.f32.mrf.mxu1  ;;  %v817_v48 = vmul.f32 %v1771_v14, %v816_v42 }
 0x658   :  { %1661 = vmatmul.msk.f32.gmra.mxu2 %vm142_vm1, %v675_v47 }
 0x659   :  { %1667 = vmatmul.msk.f32.vlgmr.msrb.gmra.mxu0 %vm142_vm1, %v817_v48 }
 0x65f   :  { %v841_v50 = vpop.f32.mrf.mxu1 }
 0x660   :  { %1668 = vmatmul.msk.f32.vlgmr.msrb.gmra.mxu3 %vm142_vm1, %v841_v50 }
 0x665   :  { %v483_v52 = vpop.f32.mrf.mxu2 }
 0x666   :  { %v517_v54 = vadd.f32 %v2149_v30, %v483_v52  ;;  %v924_v30 = vadd.f32 %v1775_v62, %v923_v19 }
 0x668   :  { %v2194_v12 = vsel %vm925_vm6, %v1775_v62, %v924_v30 }
 0x66d   :  { %v486_v53 = vpop.f32.mrf.mxu2 }
 0x66e   :  { %v520_v7 = vadd.f32 %v2128_v51, %v486_v53 }
 0x675   :  { %v706_v20 = vpop.f32.mrf.mxu2 }
 0x676   :  { %v712_v55 = vadd.f32 %v706_v20, %v517_v54 }
 0x6d6   :  { %v867_v8 = vpop.f32.mrf.mxu0 }
 0x6d7   :  { %1669 = vmatmul.msk.f32.gmra.mxu3 %vm142_vm1, %v867_v8 }
 0x6db   :  { %v709_v6 = vpop.f32.mrf.mxu2 }
 0x6dc   :  { %v713_v0 = vadd.f32 %v709_v6, %v520_v7  ;;  %v971_v6 = vlaneseq }
 0x6de   :  { %v972_v30 = vand.u32 127, %v971_v6 }
 0x6e3   :  { %v898_v57 = vpop.f32.mrf.mxu3 }
 0x6e4   :  { %v904_v58 = vadd.f32 %v898_v57, %v712_v55  ;;  %v1734_v55 = vld [vmem:[#allocation9 + $0x2] ss:$0 sm:$0xff] }
 0x6e6   :  { %v908_v59 = vadd.f32 %v1731_v56, %v904_v58 }
 0x6e8   :  { %v910_v60 = vadd.f32 %v908_v59, %v2028_v4 }
 0x6ea   :  { %v914_v28 = vsel %vm99_vm0, %v910_v60, 0.0 }
 0x6eb   :  { %915 = vadd.xlane.f32.xlu0 %v914_v28 }
 0x75a   :  { %v901_v1 = vpop.f32.mrf.mxu3 }
 0x75b   :  { %v905_v9 = vadd.f32 %v901_v1, %v713_v0  ;;  %v973_v0 = vstv %s87_s22  ;;  %v975_v1 = vstv %s1635_s23 }
 0x75c   :  { %vm974_vm14 = vcmp.ge.s32.totalorder %v972_v30, %v973_v0  ;;  %vm976_vm15 = vcmp.lt.s32.totalorder %v972_v30, %v975_v1 }
 0x75d   :  { %v909_v4 = vadd.f32 %v1731_v56, %v905_v9  ;;  %vm977_vm2 = vmand %vm974_vm14, %vm976_vm15  ;;  %v1943_v9 = vmov -1e+09  }
 0x75e   :  { %v916_v10 = vpop.xlane.xlu0 %915 }
 0x75f   :  { %v927_v13 = vmul.f32 %v2194_v12, %v916_v10  ;;  %v911_v2 = vadd.f32 %v909_v4, %v2034_v5  ;;  %v2215_v5 = vld [vmem:[%s2370_s4 + $0x20] sm:$0xff]  ;;  %v978_v4 = vsel %vm977_vm2, 0.0, %v1943_v9 }
 0x760   :  { %1005 = vmatpush.msra.mxu1 %v2215_v5 }
 0x761   :  { %v929_v11 = vsub.f32 %v910_v60, %v927_v13  ;;  %v917_v14 = vsel %vm99_vm0, %v911_v2, 0.0 }
 0x762   :  { %918 = vadd.xlane.f32.xlu1 %v917_v14  ;;  %1006 = vmatpush.msra.mxu1 %v2220_v21 }
 0x763   :  { %v931_v15 = vmul.f32 %v929_v11, %v929_v11 }
 0x765   :  { %v933_v51 = vsel %vm99_vm0, %v931_v15, 0.0 }
 0x766   :  { %934 = vadd.xlane.f32.xlu2 %v933_v51 }
 0x7d5   :  { %v919_v22 = vpop.xlane.xlu1 %918 }
 0x7d6   :  { %v928_v24 = vmul.f32 %v2194_v12, %v919_v22 }
 0x7d8   :  { %v930_v25 = vsub.f32 %v911_v2, %v928_v24 }
 0x7d9   :  { %v935_v26 = vpop.xlane.xlu2 %934 }
 0x7da   :  { %v939_v27 = vmul.f32 %v935_v26, %v2194_v12  ;;  %v932_v29 = vmul.f32 %v930_v25, %v930_v25 }
 0x7dc   :  { %v941_v31 = vadd.f32 1e-05, %v939_v27  ;;  %v936_v32 = vsel %vm99_vm0, %v932_v29, 0.0 }
 0x7dd   :  { %937 = vadd.xlane.f32.xlu0 %v936_v32 }
 0x7de   :  { %1776 = vrsqrt.f32 %v941_v31  ;;  %vm949_vm8 = vweird.f32 %v941_v31 }
 0x7e4   :  { %v1777_v33 = vpop.eup %1776 }
 0x7e5   :  { %v944_v34 = vmul.f32 %v1777_v33, %v941_v31  ;;  %vm950_vm7 = vweird.f32 %v1777_v33 }
 0x7e6   :  { %vm951_vm9 = vmor %vm949_vm8, %vm950_vm7 }
 0x7e7   :  { %v945_v35 = vmul.f32 %v1777_v33, %v944_v34 }
 0x7e9   :  { %v946_v16 = vmul.f32 0.5, %v945_v35 }
 0x7eb   :  { %v947_v36 = vsub.f32 1.5, %v946_v16 }
 0x7ed   :  { %v948_v37 = vmul.f32 %v1777_v33, %v947_v36 }
 0x7ef   :  { %v952_v39 = vsel %vm951_vm9, %v1777_v33, %v948_v37 }
 0x7f0   :  { %v963_v40 = vmul.f32 %v952_v39, %v929_v11 }
 0x7f2   :  { %v966_v49 = vmul.f32 %v1732_v38, %v963_v40 }
 0x7f4   :  { %v2227_v43 = vadd.f32 %v1733_v41, %v966_v49 }
 0x7f6   :  { %1670 = vmatmul.msk.f32.vlgmr.msra.gmra.mxu1 %vm99_vm0, %v2227_v43 }
 0x850   :  { %v938_v44 = vpop.xlane.xlu0 %937 }
 0x851   :  { %v940_v45 = vmul.f32 %v938_v44, %v2194_v12 }
 0x853   :  { %v942_v23 = vadd.f32 1e-05, %v940_v45 }
 0x855   :  { %1778 = vrsqrt.f32 %v942_v23  ;;  %vm959_vm11 = vweird.f32 %v942_v23 }
 0x85b   :  { %v1779_v46 = vpop.eup %1778 }
 0x85c   :  { %v954_v42 = vmul.f32 %v1779_v46, %v942_v23  ;;  %vm960_vm10 = vweird.f32 %v1779_v46  ;;  %v1724_v23 = vpack.i.bf16 %v2220_v21, %v2215_v5 }
 0x85d   :  { %vm961_vm12 = vmor %vm959_vm11, %vm960_vm10 }
 0x85e   :  { %v955_v47 = vmul.f32 %v1779_v46, %v954_v42 }
 0x860   :  { %v956_v48 = vmul.f32 0.5, %v955_v47 }
 0x862   :  { %v957_v50 = vsub.f32 1.5, %v956_v48 }
 0x864   :  { %v958_v52 = vmul.f32 %v1779_v46, %v957_v50 }
 0x866   :  { %v962_v53 = vsel %vm961_vm12, %v1779_v46, %v958_v52 }
 0x867   :  { %v964_v8 = vmul.f32 %v962_v53, %v930_v25 }
 0x869   :  { %v967_v20 = vmul.f32 %v1732_v38, %v964_v8 }
 0x86b   :  { %v2232_v54 = vadd.f32 %v1733_v41, %v967_v20 }
 0x86d   :  { %1671 = vmatmul.msk.f32.gmra.mxu1 %vm99_vm0, %v2232_v54 }
 0x873   :  { %v1008_v56 = vpop.f32.mrf.mxu1 }
 0x874   :  { %v2236_v57 = vadd.f32 %v1734_v55, %v1008_v56 }
 0x876   :  { %1177 = vrot.lane.b32.xlu0 %v2236_v57, %s1935_s11  ;;  %1017 = vrot.lane.b32.xlu1 %v2236_v57, %s1931_s27  ;;  %v1014_v58 = vmul.f32 0.25, %v2236_v57 }
 0x878   :  { %1175 = vrot.lane.b32.xlu2 %v1014_v58, %s1934_s3 }
 0x8d2   :  { %v1176_v61 = vpop.permute.xlu2 %1175 }
 0x8e8   :  { %v1178_v59 = vpop.permute.xlu0 %1177  ;;  %v1018_v60 = vpop.permute.xlu1 %1017 }
 0x8e9   :  { %1672 = vmatpush.xpose.msk.msra.mxu2 %vm1019_vm13, %v1018_v60  ;;  %1678 = vmatpush.xpose.msk.msra.mxu3 %vm1019_vm13, %v1178_v59 }
 0x8ea   :  { %v1011_v28 = vpop.f32.mrf.mxu1 }
 0x8eb   :  { %v2246_v62 = vadd.f32 %v1734_v55, %v1011_v28 }
 0x8ec   :  { %1673 = vmatmul.msk.f32.vlgmr.msra.gmra.mxu2 %vm1019_vm13, %v1014_v58  ;;  %1679 = vmatmul.msk.f32.vlgmr.msra.gmra.mxu3 %vm1019_vm13, %v1176_v61 }
 0x8ed   :  { %1046 = vrot.lane.b32.xlu0 %v2246_v62, %s1931_s27  ;;  %1205 = vrot.lane.b32.xlu1 %v2246_v62, %s1935_s11  ;;  %v1015_v63 = vmul.f32 0.25, %v2246_v62 }
 0x8ef   :  { %1203 = vrot.lane.b32.xlu2 %v1015_v63, %s1934_s3 }
 0x949   :  { %v1204_v7 = vpop.permute.xlu2 %1203 }
 0x95f   :  { %v1047_v3 = vpop.permute.xlu0 %1046  ;;  %v1206_v19 = vpop.permute.xlu1 %1205 }
 0x960   :  { %1674 = vmatpush.xpose.msk.msra.mxu0 %vm1019_vm13, %v1047_v3  ;;  %1680 = vmatpush.xpose.msk.msrb.mxu1 %vm1019_vm13, %v1206_v19  ;;  %v1719_v19 = vpack.i.bf16 %v2209_v18, %v2203_v17 }
 0x963   :  { %1675 = vmatmul.msk.f32.vlgmr.msra.gmra.mxu0 %vm1019_vm13, %v1015_v63  ;;  %1681 = vmatmul.msk.f32.vlgmr.msrb.gmra.mxu1 %vm1019_vm13, %v1204_v7 }
 0x96f   :  { %v1042_v10 = vpop.f32.mrf.mxu2  ;;  %v1200_v13 = vpop.f32.mrf.mxu3 }
 0x970   :  { %v1043_v2 = vadd.f32 %v1042_v10, %v978_v4  ;;  %v1201_v11 = vadd.f32 %v1200_v13, %v978_v4 }
 0x972   :  { %v1231_v14 = vsel %vm142_vm1, %v1201_v11, -inf  ;;  %v1073_v15 = vsel %vm142_vm1, %v1043_v2, -inf }
 0x973   :  { %1232 = vmax.xlane.f32.xlu1 %v1231_v14  ;;  %1074 = vmax.xlane.f32.xlu0 %v1073_v15 }
 0x9e0   :  { %v1070_v51 = vpop.f32.mrf.mxu0  ;;  %v1228_v22 = vpop.f32.mrf.mxu1 }
 0x9e1   :  { %v1071_v24 = vadd.f32 %v1070_v51, %v978_v4  ;;  %v1229_v25 = vadd.f32 %v1228_v22, %v978_v4 }
 0x9e3   :  { %v1076_v26 = vsel %vm142_vm1, %v1071_v24, -inf  ;;  %v1234_v27 = vsel %vm142_vm1, %v1229_v25, -inf }
 0x9e4   :  { %1077 = vmax.xlane.f32.xlu2 %v1076_v26  ;;  %1235 = vmax.xlane.f32.xlu0 %v1234_v27 }
 0x9e6   :  { %v1233_v29 = vpop.xlane.xlu1 %1232  ;;  %v1075_v31 = vpop.xlane.xlu0 %1074 }
 0x9e7   :  { %v1237_v32 = vsub.f32 %v1201_v11, %v1233_v29  ;;  %v1079_v33 = vsub.f32 %v1043_v2, %v1075_v31 }
 0x9e9   :  { %v1239_v34 = vmul.f32 1.442695, %v1237_v32  ;;  %v1081_v35 = vmul.f32 1.442695, %v1079_v33 }
 0x9eb   :  { %1780 = vpow2.f32 %v1239_v34 }
 0x9ec   :  { %1782 = vpow2.f32 %v1081_v35 }
 0x9f1   :  { %v2264_v16 = vpop.eup %1780 }
 0x9f2   :  { %v1783_v36 = vpop.eup %1782  ;;  %v1243_v37 = vsel %vm142_vm1, %v2264_v16, 0.0 }
 0x9f3   :  { %1244 = vadd.xlane.f32.xlu1 %v1243_v37  ;;  %v1085_v38 = vsel %vm142_vm1, %v1783_v36, 0.0 }
 0x9f4   :  { %1086 = vadd.xlane.f32.xlu2 %v1085_v38 }
 0xa0c   :  { %1121 = vrot.lane.b32.xlu2 %v2236_v57, %s1933_s8 }
 0xa14   :  { %1305 = vrot.lane.b32.xlu2 %v2246_v62, %s1939_s14 }
 0xa1c   :  { %1725 = vrot.lane.b32.xlu2 %v1724_v23, %s1937_s13 }
 0xa57   :  { %v1078_v39 = vpop.xlane.xlu2 %1077  ;;  %v1236_v40 = vpop.xlane.xlu0 %1235 }
 0xa58   :  { %v1080_v41 = vsub.f32 %v1071_v24, %v1078_v39  ;;  %v1238_v49 = vsub.f32 %v1229_v25, %v1236_v40 }
 0xa5a   :  { %v1083_v44 = vmul.f32 1.442695, %v1080_v41  ;;  %v1241_v45 = vmul.f32 1.442695, %v1238_v49 }
 0xa5c   :  { %1784 = vpow2.f32 %v1083_v44 }
 0xa5d   :  { %1786 = vpow2.f32 %v1241_v45 }
 0xa62   :  { %v2276_v46 = vpop.eup %1784 }
 0xa63   :  { %v2278_v42 = vpop.eup %1786  ;;  %v1088_v47 = vsel %vm142_vm1, %v2276_v46, 0.0 }
 0xa64   :  { %1089 = vadd.xlane.f32.xlu0 %v1088_v47  ;;  %v1246_v48 = vsel %vm142_vm1, %v2278_v42, 0.0 }
 0xa65   :  { %1247 = vadd.xlane.f32.xlu1 %v1246_v48 }
 0xa66   :  { %v1245_v61 = vpop.xlane.xlu1 %1244 }
 0xa67   :  { %v1087_v50 = vpop.xlane.xlu2 %1086  ;;  %v1260_v17 = vand.u32 2147483648, %v1245_v61  ;;  %vm1254_vm8 = vweird.f32 %v1245_v61  ;;  %v1258_v11 = vand.u32 2147483647, %v1245_v61 }
 0xa68   :  { %1788 = vrcp.f32 %v1087_v50  ;;  %v1102_v21 = vand.u32 2147483648, %v1087_v50  ;;  %v1100_v55 = vand.u32 2147483647, %v1087_v50  ;;  %vm1096_vm4 = vweird.f32 %v1087_v50 }
 0xa69   :  { %1790 = vrcp.f32 %v1245_v61  ;;  %v1261_v22 = vor.u32 1.1754944e-38, %v1260_v17  ;;  %vm1259_vm10 = vcmp.eq.f32.partialorder %v1258_v11, 8.507059e+37 }
 0xa6a   :  { %v1103_v58 = vor.u32 1.1754944e-38, %v1102_v21  ;;  %vm1101_vm6 = vcmp.eq.f32.partialorder %v1100_v55, 8.507059e+37 }
 0xa6e   :  { %v1789_v52 = vpop.eup %1788 }
 0xa6f   :  { %v1092_v53 = vmul.f32 %v1789_v52, %v1087_v50  ;;  %v1122_v8 = vpop.permute.xlu2 %1121  ;;  %vm1097_vm3 = vweird.f32 %v1789_v52  ;;  %v1791_v3 = vpop.eup %1790 }
 0xa70   :  { %1142 = vmatpush.msrb.mxu2 %v1122_v8  ;;  %vm1098_vm5 = vmor %vm1096_vm4, %vm1097_vm3  ;;  %v1250_v7 = vmul.f32 %v1791_v3, %v1245_v61  ;;  %vm1255_vm7 = vweird.f32 %v1791_v3 }
 0xa71   :  { %v1093_v5 = vsub.f32 1.0, %v1092_v53  ;;  %vm1256_vm9 = vmor %vm1254_vm8, %vm1255_vm7 }
 0xa72   :  { %v1251_v1 = vsub.f32 1.0, %v1250_v7 }
 0xa73   :  { %v1094_v20 = vmul.f32 %v1789_v52, %v1093_v5 }
 0xa75   :  { %v1095_v56 = vadd.f32 %v1789_v52, %v1094_v20 }
 0xa77   :  { %v1099_v59 = vsel %vm1098_vm5, %v1789_v52, %v1095_v56  ;;  %v1306_v63 = vpop.permute.xlu2 %1305 }
 0xa78   :  { %v1104_v60 = vsel %vm1101_vm6, %v1103_v58, %v1099_v59  ;;  %1279 = vrot.lane.b32.xlu0 %v2236_v57, %s1939_s14 }
 0xa79   :  { %v1105_v28 = vmul.f32 %v1783_v36, %v1104_v60 }
 0xa7b   :  { %1676 = vmatmul.msk.f32.vlgmr.msrb.gmra.mxu2 %vm142_vm1, %v1105_v28 }
 0xa7e   :  { %1147 = vrot.lane.b32.xlu1 %v2246_v62, %s1933_s8  ;;  %v1252_v62 = vmul.f32 %v1791_v3, %v1251_v1 }
 0xa7f   :  { %v1726_v6 = vpop.permute.xlu2 %1725 }
 0xa80   :  { %v1728_v30 = vunpack.i.h.bf16 %v1726_v6  ;;  %v1727_v0 = vunpack.i.l.bf16 %v1726_v6  ;;  %1720 = vrot.lane.b32.xlu0 %v1719_v19, %s1937_s13  ;;  %v1253_v2 = vadd.f32 %v1791_v3, %v1252_v62  ;;  %v1467_v62 = vld [vmem:[%s2370_s4 + $0x40] sm:$0xff] }
 0xa82   :  { %1398 = vmatpush.msra.mxu1 %v1727_v0  ;;  %v1257_v51 = vsel %vm1256_vm9, %v1791_v3, %v1253_v2 }
 0xa83   :  { %v1262_v26 = vsel %vm1259_vm10, %v1261_v22, %v1257_v51  ;;  %vm1528_vm10 = vcmask 523264  }
 0xa84   :  { %1399 = vmatpush.msra.mxu1 %v1728_v30  ;;  %v1263_v34 = vmul.f32 %v2264_v16, %v1262_v26 }
 0xad7   :  { %v1090_v57 = vpop.xlane.xlu0 %1089 }
 0xad8   :  { %v1248_v9 = vpop.xlane.xlu1 %1247  ;;  %1792 = vrcp.f32 %v1090_v57  ;;  %v1117_v27 = vand.u32 2147483648, %v1090_v57  ;;  %vm1111_vm12 = vweird.f32 %v1090_v57  ;;  %v1115_v29 = vand.u32 2147483647, %v1090_v57 }
 0xad9   :  { %1794 = vrcp.f32 %v1248_v9  ;;  %v1275_v38 = vand.u32 2147483648, %v1248_v9  ;;  %vm1269_vm3 = vweird.f32 %v1248_v9  ;;  %v1273_v39 = vand.u32 2147483647, %v1248_v9 }
 0xada   :  { %v1118_v35 = vor.u32 1.1754944e-38, %v1117_v27  ;;  %vm1116_vm15 = vcmp.eq.f32.partialorder %v1115_v29, 8.507059e+37 }
 0xadb   :  { %v1276_v16 = vor.u32 1.1754944e-38, %v1275_v38  ;;  %vm1274_vm5 = vcmp.eq.f32.partialorder %v1273_v39, 8.507059e+37 }
 0xade   :  { %v1793_v4 = vpop.eup %1792 }
 0xadf   :  { %v1795_v10 = vpop.eup %1794  ;;  %v1107_v13 = vmul.f32 %v1793_v4, %v1090_v57  ;;  %vm1112_vm11 = vweird.f32 %v1793_v4 }
 0xae0   :  { %v1265_v14 = vmul.f32 %v1795_v10, %v1248_v9  ;;  %vm1113_vm14 = vmor %vm1111_vm12, %vm1112_vm11  ;;  %vm1270_vm2 = vweird.f32 %v1795_v10 }
 0xae1   :  { %v1108_v18 = vsub.f32 1.0, %v1107_v13  ;;  %vm1271_vm4 = vmor %vm1269_vm3, %vm1270_vm2 }
 0xae2   :  { %v1266_v24 = vsub.f32 1.0, %v1265_v14 }
 0xae3   :  { %v1109_v15 = vmul.f32 %v1793_v4, %v1108_v18 }
 0xae4   :  { %v1267_v31 = vmul.f32 %v1795_v10, %v1266_v24 }
 0xae5   :  { %v1110_v25 = vadd.f32 %v1793_v4, %v1109_v15 }
 0xae6   :  { %v1268_v37 = vadd.f32 %v1795_v10, %v1267_v31  ;;  %v1736_v31 = vld [vmem:[#allocation9 + $0x8] ss:$0 sm:$0xff] }
 0xae7   :  { %v1114_v32 = vsel %vm1113_vm14, %v1793_v4, %v1110_v25  ;;  %v1466_v4 = vld [vmem:[%s2370_s4 + $0x28] sm:$0xff] }
 0xae8   :  { %v1119_v36 = vsel %vm1116_vm15, %v1118_v35, %v1114_v32  ;;  %v1272_v49 = vsel %vm1271_vm4, %v1795_v10, %v1268_v37  ;;  %v1465_v10 = vld [vmem:[%s2370_s4 + $0x10] sm:$0xff]  ;;  %v1737_v35 = vld [vmem:[#allocation9 + $0x9] ss:$0 sm:$0xff] }
 0xae9   :  { %v1120_v41 = vmul.f32 %v2276_v46, %v1119_v36  ;;  %v1277_v44 = vsel %vm1274_vm5, %v1276_v16, %v1272_v49 }
 0xaea   :  { %v1280_v33 = vpop.permute.xlu0 %1279  ;;  %v1278_v45 = vmul.f32 %v2278_v42, %v1277_v44  ;;  %v1735_v42 = vld [vmem:[#allocation9 + $0x3] ss:$0 sm:$0xff] }
 0xaeb   :  { %1300 = vmatpush.msra.mxu2 %v1280_v33 }
 0xaec   :  { %1682 = vmatmul.msk.f32.vlgmr.msra.gmra.mxu2 %vm142_vm1, %v1263_v34 }
 0xaf0   :  { %v1148_v40 = vpop.permute.xlu1 %1147 }
 0xaf1   :  { %1168 = vmatpush.msrb.mxu0 %v1148_v40 }
 0xaf2   :  { %1677 = vmatmul.msk.f32.vlgmr.msrb.gmra.mxu0 %vm142_vm1, %v1120_v41  ;;  %v1721_v47 = vpop.permute.xlu0 %1720 }
 0xaf3   :  { %1326 = vmatpush.msra.mxu0 %v1306_v63  ;;  %v1723_v48 = vunpack.i.h.bf16 %v1721_v47  ;;  %v1722_v50 = vunpack.i.l.bf16 %v1721_v47  ;;  %v1523_v47 = vld [vmem:[%s2371_s5 + $0x28] sm:$0xff] }
 0xaf5   :  { %1361 = vmatpush.msrb.mxu3 %v1722_v50  ;;  %v1521_v50 = vld [vmem:[%s2371_s5 + $0x18] sm:$0xff] }
 0xaf7   :  { %1362 = vmatpush.msrb.mxu3 %v1723_v48  ;;  %v1522_v48 = vld [vmem:[%s2371_s5 + $0x20] sm:$0xff] }
 0xafa   :  { %1683 = vmatmul.msk.f32.vlgmr.msra.gmra.mxu0 %vm142_vm1, %v1278_v45  ;;  %v1525_v45 = vld [vmem:[%s2371_s5 + $0x38] sm:$0xff] }
 0xafb   :  { %1543 = vmatpush.msrb.mxu0 %v1525_v45 }
 0xafe   :  { %v1144_v23 = vpop.f32.mrf.mxu2 }
 0xaff   :  { %1686 = vmatmul.msk.f32.vlgmr.msra.gmra.mxu1 %vm1019_vm13, %v1144_v23  ;;  %v1524_v23 = vld [vmem:[%s2371_s5 + $0x30] sm:$0xff] }
 0xb00   :  { %1544 = vmatpush.msrb.mxu0 %v1524_v23  ;;  %v1740_v23 = vld [vmem:[#allocation9 + $0xa] ss:$0 sm:$0xff] }
 0xb02   :  { %1545 = vmatpush.msrb.mxu0 %v1523_v47 }
 0xb04   :  { %1546 = vmatpush.msrb.mxu0 %v1522_v48 }
 0xb06   :  { %1547 = vmatpush.msrb.mxu0 %v1521_v50 }
 0xb6f   :  { %v1170_v46 = vpop.f32.mrf.mxu0  ;;  %v1302_v52 = vpop.f32.mrf.mxu2 }
 0xb70   :  { %1687 = vmatmul.msk.f32.gmra.mxu1 %vm1019_vm13, %v1170_v46  ;;  %1684 = vmatmul.msk.f32.vlgmr.msrb.gmra.mxu3 %vm1019_vm13, %v1302_v52  ;;  %v1520_v46 = vld [vmem:[%s2371_s5 + $0x10] sm:$0xff]  ;;  %v1519_v52 = vld [vmem:[%s2371_s5 + $0x8] sm:$0xff] }
 0xb71   :  { %1548 = vmatpush.msrb.mxu0 %v1520_v46  ;;  %v1741_v46 = vld [vmem:[#allocation9 + $0xb] ss:$0 sm:$0xff] }
 0xb73   :  { %1549 = vmatpush.msrb.mxu0 %v1519_v52 }
 0xb77   :  { %v1328_v53 = vpop.f32.mrf.mxu0 }
 0xb78   :  { %1685 = vmatmul.msk.f32.gmra.mxu3 %vm1019_vm13, %v1328_v53  ;;  %v1518_v53 = vld [vmem:[%s2371_s5] sm:$0xff]  ;;  %s1944_s5 = smov [#allocation10]  }
 0xb79   :  { %1550 = vmatpush.msrb.mxu0 %v1518_v53  ;;  %s1618_s21 = sshll.u32 %s1944_s5, 4  ;;  %s1619_s21 = int_to_ptr.vmem [resolvable:$true] %s1618_s21 }
 0xb7c   :  { %v1401_v8 = vpop.f32.mrf.mxu1 }
 0xbed   :  { %v1404_v58 = vpop.f32.mrf.mxu1 }
 0xbf3   :  { %v1364_v5 = vpop.f32.mrf.mxu3 }
 0xbf4   :  { %v1402_v21 = vadd.f32 %v1401_v8, %v1364_v5 }
 0xbf6   :  { %v1409_v20 = vadd.f32 %v1735_v42, %v1402_v21 }
 0xbf8   :  { %v1411_v55 = vadd.f32 %v1409_v20, %v2227_v43 }
 0xbfa   :  { %v1415_v56 = vsel %vm99_vm0, %v1411_v55, 0.0 }
 0xbfb   :  { %1416 = vadd.xlane.f32.xlu0 %v1415_v56  ;;  %v1367_v59 = vpop.f32.mrf.mxu3 }
 0xbfc   :  { %v1405_v60 = vadd.f32 %v1404_v58, %v1367_v59 }
 0xbfe   :  { %v1410_v28 = vadd.f32 %v1735_v42, %v1405_v60  ;;  %v1738_v42 = vld [vmem:[#allocation9 + $0x4] ss:$0 sm:$0xff] }
 0xc00   :  { %v1412_v61 = vadd.f32 %v1410_v28, %v2232_v54  ;;  %v1468_v54 = vld [vmem:[%s2370_s4 + $0x58] sm:$0xff] }
 0xc01   :  { %1489 = vmatpush.msrb.mxu2 %v1468_v54  ;;  %v1739_v54 = vld [vmem:[#allocation9 + $0x5] ss:$0 sm:$0xff] }
 0xc02   :  { %v1418_v63 = vsel %vm99_vm0, %v1412_v61, 0.0 }
 0xc03   :  { %1419 = vadd.xlane.f32.xlu1 %v1418_v63  ;;  %1490 = vmatpush.msrb.mxu2 %v1467_v62 }
 0xc05   :  { %1491 = vmatpush.msrb.mxu2 %v1466_v4 }
 0xc07   :  { %1492 = vmatpush.msrb.mxu2 %v1465_v10 }
 0xc6e   :  { %v1417_v3 = vpop.xlane.xlu0 %1416 }
 0xc6f   :  { %v1421_v19 = vmul.f32 %v1417_v3, %v2194_v12 }
 0xc71   :  { %v1423_v6 = vsub.f32 %v1411_v55, %v1421_v19 }
 0xc73   :  { %v1425_v7 = vmul.f32 %v1423_v6, %v1423_v6 }
 0xc75   :  { %v1427_v30 = vsel %vm99_vm0, %v1425_v7, 0.0 }
 0xc76   :  { %1428 = vadd.xlane.f32.xlu2 %v1427_v30  ;;  %v1420_v43 = vpop.xlane.xlu1 %1419 }
 0xc77   :  { %v1422_v0 = vmul.f32 %v1420_v43, %v2194_v12 }
 0xc79   :  { %v1424_v57 = vsub.f32 %v1412_v61, %v1422_v0 }
 0xc7b   :  { %v1426_v1 = vmul.f32 %v1424_v57, %v1424_v57 }
 0xc7d   :  { %v1430_v9 = vsel %vm99_vm0, %v1426_v1, 0.0 }
 0xc7e   :  { %1431 = vadd.xlane.f32.xlu0 %v1430_v9 }
 0xce9   :  { %v1429_v13 = vpop.xlane.xlu2 %1428 }
 0xcea   :  { %v1433_v2 = vmul.f32 %v1429_v13, %v2194_v12 }
 0xcec   :  { %v1435_v17 = vadd.f32 1e-05, %v1433_v2 }
 0xcee   :  { %1796 = vrsqrt.f32 %v1435_v17  ;;  %vm1443_vm13 = vweird.f32 %v1435_v17 }
 0xcf1   :  { %v1432_v18 = vpop.xlane.xlu0 %1431 }
 0xcf2   :  { %v1434_v11 = vmul.f32 %v1432_v18, %v2194_v12 }
 0xcf4   :  { %v1797_v14 = vpop.eup %1796  ;;  %v1436_v15 = vadd.f32 1e-05, %v1434_v11 }
 0xcf5   :  { %v1438_v51 = vmul.f32 %v1797_v14, %v1435_v17  ;;  %vm1444_vm1 = vweird.f32 %v1797_v14 }
 0xcf6   :  { %1798 = vrsqrt.f32 %v1436_v15  ;;  %vm1445_vm6 = vmor %vm1443_vm13, %vm1444_vm1  ;;  %vm1453_vm8 = vweird.f32 %v1436_v15 }
 0xcf7   :  { %v1439_v22 = vmul.f32 %v1797_v14, %v1438_v51 }
 0xcf9   :  { %v1440_v24 = vmul.f32 0.5, %v1439_v22 }
 0xcfb   :  { %v1441_v25 = vsub.f32 1.5, %v1440_v24 }
 0xcfc   :  { %v1799_v26 = vpop.eup %1798 }
 0xcfd   :  { %v1442_v27 = vmul.f32 %v1797_v14, %v1441_v25  ;;  %v1448_v29 = vmul.f32 %v1799_v26, %v1436_v15  ;;  %vm1454_vm7 = vweird.f32 %v1799_v26 }
 0xcfe   :  { %vm1455_vm9 = vmor %vm1453_vm8, %vm1454_vm7 }
 0xcff   :  { %v1446_v32 = vsel %vm1445_vm6, %v1797_v14, %v1442_v27  ;;  %v1449_v33 = vmul.f32 %v1799_v26, %v1448_v29 }
 0xd00   :  { %v1457_v34 = vmul.f32 %v1446_v32, %v1423_v6 }
 0xd01   :  { %v1450_v36 = vmul.f32 0.5, %v1449_v33 }
 0xd02   :  { %v1460_v37 = vmul.f32 %v1736_v31, %v1457_v34 }
 0xd03   :  { %v1451_v38 = vsub.f32 1.5, %v1450_v36 }
 0xd04   :  { %v1463_v39 = vadd.f32 %v1737_v35, %v1460_v37 }
 0xd05   :  { %v1452_v40 = vmul.f32 %v1799_v26, %v1451_v38 }
 0xd06   :  { %1688 = vmatmul.msk.f32.vlgmr.msrb.gmra.mxu2 %vm99_vm0, %v1463_v39 }
 0xd07   :  { %v1456_v41 = vsel %vm1455_vm9, %v1799_v26, %v1452_v40 }
 0xd08   :  { %v1458_v49 = vmul.f32 %v1456_v41, %v1424_v57 }
 0xd0a   :  { %v1461_v16 = vmul.f32 %v1736_v31, %v1458_v49 }
 0xd0c   :  { %v1464_v44 = vadd.f32 %v1737_v35, %v1461_v16 }
 0xd0e   :  { %1689 = vmatmul.msk.f32.gmra.mxu2 %vm99_vm0, %v1464_v44 }
 0xd89   :  { %v1494_v8 = vpop.f32.mrf.mxu2 }
 0xd8a   :  { %v1495_v5 = vadd.f32 %v1738_v42, %v1494_v8 }
 0xd8c   :  { %v1502_v21 = vmul.f32 0.044715, %v1495_v5  ;;  %v1500_v7 = vmul.f32 0.5, %v1495_v5 }
 0xd8e   :  { %v1504_v20 = vmul.f32 %v1502_v21, %v1495_v5 }
 0xd90   :  { %v1506_v55 = vmul.f32 %v1504_v20, %v1495_v5 }
 0xd91   :  { %v1497_v56 = vpop.f32.mrf.mxu2 }
 0xd92   :  { %v1508_v58 = vadd.f32 %v1506_v55, %v1495_v5  ;;  %v1498_v59 = vadd.f32 %v1738_v42, %v1497_v56 }
 0xd94   :  { %v1510_v60 = vmul.f32 0.7978846, %v1508_v58  ;;  %v1503_v28 = vmul.f32 0.044715, %v1498_v59  ;;  %v1501_v57 = vmul.f32 0.5, %v1498_v59 }
 0xd96   :  { %1800 = vtanh.f32 %v1510_v60  ;;  %v1505_v61 = vmul.f32 %v1503_v28, %v1498_v59 }
 0xd98   :  { %v1507_v63 = vmul.f32 %v1505_v61, %v1498_v59 }
 0xd9a   :  { %v1509_v3 = vadd.f32 %v1507_v63, %v1498_v59 }
 0xd9c   :  { %v1801_v19 = vpop.eup %1800  ;;  %v1511_v6 = vmul.f32 0.7978846, %v1509_v3 }
 0xd9d   :  { %v1514_v30 = vadd.f32 1.0, %v1801_v19 }
 0xd9e   :  { %1802 = vtanh.f32 %v1511_v6 }
 0xd9f   :  { %v1516_v43 = vmul.f32 %v1514_v30, %v1500_v7 }
 0xda1   :  { %1690 = vmatmul.msk.f32.vlgmr.msrb.gmra.mxu0 %vm1528_vm10, %v1516_v43 }
 0xda4   :  { %v1803_v0 = vpop.eup %1802 }
 0xda5   :  { %v1515_v1 = vadd.f32 1.0, %v1803_v0 }
 0xda7   :  { %v1517_v9 = vmul.f32 %v1515_v1, %v1501_v57 }
 0xda9   :  { %1691 = vmatmul.msk.f32.gmra.mxu0 %vm1528_vm10, %v1517_v9 }
 0xe1e   :  { %v1552_v62 = vpop.f32.mrf.mxu0 }
 0xe1f   :  { %v1553_v4 = vadd.f32 %v1739_v54, %v1552_v62 }
 0xe21   :  { %v1558_v10 = vadd.f32 %v1553_v4, %v1463_v39 }
 0xe23   :  { %v1562_v13 = vsel %vm99_vm0, %v1558_v10, 0.0 }
 0xe24   :  { %1563 = vadd.xlane.f32.xlu1 %v1562_v13 }
 0xe26   :  { %v1555_v2 = vpop.f32.mrf.mxu0 }
 0xe27   :  { %v1556_v17 = vadd.f32 %v1739_v54, %v1555_v2 }
 0xe29   :  { %v1559_v18 = vadd.f32 %v1556_v17, %v1464_v44 }
 0xe2b   :  { %v1565_v11 = vsel %vm99_vm0, %v1559_v18, 0.0 }
 0xe2c   :  { %1566 = vadd.xlane.f32.xlu2 %v1565_v11 }
 0xe97   :  { %v1564_v14 = vpop.xlane.xlu1 %1563 }
 0xe98   :  { %v1568_v15 = vmul.f32 %v1564_v14, %v2194_v12 }
 0xe9a   :  { %v1570_v51 = vsub.f32 %v1558_v10, %v1568_v15 }
 0xe9c   :  { %v1572_v22 = vmul.f32 %v1570_v51, %v1570_v51 }
 0xe9e   :  { %v1574_v24 = vsel %vm99_vm0, %v1572_v22, 0.0 }
 0xe9f   :  { %v1567_v25 = vpop.xlane.xlu2 %1566  ;;  %1575 = vadd.xlane.f32.xlu0 %v1574_v24 }
 0xea0   :  { %v1569_v26 = vmul.f32 %v1567_v25, %v2194_v12 }
 0xea2   :  { %v1571_v27 = vsub.f32 %v1559_v18, %v1569_v26 }
 0xea4   :  { %v1573_v29 = vmul.f32 %v1571_v27, %v1571_v27 }
 0xea6   :  { %v1577_v31 = vsel %vm99_vm0, %v1573_v29, 0.0 }
 0xea7   :  { %1578 = vadd.xlane.f32.xlu1 %v1577_v31 }
 0xf12   :  { %v1576_v32 = vpop.xlane.xlu0 %1575 }
 0xf13   :  { %v1580_v33 = vmul.f32 %v1576_v32, %v2194_v12 }
 0xf15   :  { %v1582_v34 = vadd.f32 1e-05, %v1580_v33 }
 0xf17   :  { %1804 = vrsqrt.f32 %v1582_v34  ;;  %vm1590_vm12 = vweird.f32 %v1582_v34 }
 0xf1a   :  { %v1579_v35 = vpop.xlane.xlu1 %1578 }
 0xf1b   :  { %v1581_v36 = vmul.f32 %v1579_v35, %v2194_v12 }
 0xf1d   :  { %v1805_v37 = vpop.eup %1804  ;;  %v1583_v38 = vadd.f32 1e-05, %v1581_v36 }
 0xf1e   :  { %v1585_v39 = vmul.f32 %v1805_v37, %v1582_v34  ;;  %vm1591_vm11 = vweird.f32 %v1805_v37 }
 0xf1f   :  { %1806 = vrsqrt.f32 %v1583_v38  ;;  %vm1592_vm14 = vmor %vm1590_vm12, %vm1591_vm11  ;;  %vm1600_vm2 = vweird.f32 %v1583_v38 }
 0xf20   :  { %v1586_v40 = vmul.f32 %v1805_v37, %v1585_v39 }
 0xf22   :  { %v1587_v41 = vmul.f32 0.5, %v1586_v40 }
 0xf24   :  { %v1588_v49 = vsub.f32 1.5, %v1587_v41 }
 0xf25   :  { %v1807_v16 = vpop.eup %1806 }
 0xf26   :  { %v1589_v44 = vmul.f32 %v1805_v37, %v1588_v49  ;;  %v1595_v45 = vmul.f32 %v1807_v16, %v1583_v38  ;;  %vm1601_vm15 = vweird.f32 %v1807_v16 }
 0xf27   :  { %vm1602_vm3 = vmor %vm1600_vm2, %vm1601_vm15 }
 0xf28   :  { %v1593_v47 = vsel %vm1592_vm14, %v1805_v37, %v1589_v44  ;;  %v1596_v48 = vmul.f32 %v1807_v16, %v1595_v45 }
 0xf29   :  { %v1604_v50 = vmul.f32 %v1593_v47, %v1570_v51 }
 0xf2a   :  { %v1597_v52 = vmul.f32 0.5, %v1596_v48 }
 0xf2b   :  { %v1607_v12 = vmul.f32 %v1740_v23, %v1604_v50 }
 0xf2c   :  { %v1598_v53 = vsub.f32 1.5, %v1597_v52 }
 0xf2d   :  { %v1610_v42 = vadd.f32 %v1741_v46, %v1607_v12 }
 0xf2e   :  { %v1599_v8 = vmul.f32 %v1807_v16, %v1598_v53 }
 0xf2f   :  { %1612 = vst.msk [vmem:[#allocation10] sm:$0xff] %vm99_vm0, %v1610_v42 }
 0xf30   :  { %v1603_v5 = vsel %vm1602_vm3, %v1807_v16, %v1599_v8 }
 0xf31   :  { %v1605_v21 = vmul.f32 %v1603_v5, %v1571_v27 }
 0xf33   :  { %v1608_v20 = vmul.f32 %v1740_v23, %v1605_v21 }
 0xf35   :  { %v1611_v55 = vadd.f32 %v1741_v46, %v1608_v20 }
 0xf37   :  { %1613 = vst.msk [vmem:[#allocation10 + $0x8] sm:$0xff] %vm99_vm0, %v1611_v55 }
 0xf38   :  { %1626 = dma.vmem_to_hbm [thread:$0]  %s1619_s21, 256, %s1621_s24, [#allocation4], %s1925_s9, %s1925_s9, %s1926_s10  }
 0xf39   :  { %1922 = dma.done.wait [#allocation4], 256  }
 0xf3a   :  { %1923 = vsyncadd [#allocation4], 4294967040 }
 0xf3b   :  { %1631 = vsyncpa [#allocation3], 1 }
 0xf3c   :  { %1632 = vsyncpa [#allocation8], 1 }
 0xf3d   :  { %1633 = vsyncpa [#allocation4], 1 }
 0xf3e   :  { %1634 = vsyncpa [#allocation5], 1 }

</bundles_post_ra>
